<compile_context>
chip_gen: v7x
topology: tpu7x:2x2x1
jax: 0.10.0
libtpu: 0.0.40
codegen_flags: <defaults>
</compile_context>

<pallas_src>
import functools

import jax
import jax.numpy as jnp
from jax.experimental import pallas as pl
from jax.experimental.pallas import tpu as pltpu


# ----------------------------- Pallas kernel ------------------------------- #
def _cg_kernel(w_ref, x_ref, y_ref, out_ref, *, num_iter):
    # W = [[Mr^T, Mi^T], [-Mi^T, Mr^T]] is prebuilt in the wrapper, so a single
    # MXU matmul performs the full complex matvec on the stacked [B, 2N] vectors.
    w = w_ref[...]                      # [2N, 2N]
    x = x_ref[...]                      # [B, 2N]  (re | im)
    y = y_ref[...]                      # [B, 2N]

    def apply_A(v):
        # one MXU push/drain per complex matvec (instead of four)
        return jnp.dot(v, w, preferred_element_type=jnp.float32)

    # r = y - A(x);  rsold = Re(zdot(r, r));  p = r
    r = y - apply_A(x)
    rsold = jnp.sum(r * r)
    p = r

    def body(_, carry):
        x, p, r, rsold = carry
        Ap = apply_A(p)
        # zdot(p, Ap): for a Hermitian PD operator the imaginary part is 0, and
        # the real part equals the plain dot product of the stacked vectors.
        pAp = jnp.sum(p * Ap)
        alpha = rsold / pAp             # exact scalar division (no approx)
        x = x + alpha * p
        r = r - alpha * Ap
        rsnew = jnp.sum(r * r)          # zdot_single(r)
        beta = rsnew / rsold
        p = beta * p + r
        return (x, p, r, rsnew)

    # num_iter is small and static -> fully unroll for scheduler visibility.
    x, p, r, rsold = jax.lax.fori_loop(
        0, num_iter, body, (x, p, r, rsold), unroll=True)

    out_ref[...] = x


# ------------------------------ JAX wrapper -------------------------------- #
def conjugate_gradient(m_re, m_im, x_re, x_im, y_re, y_im, num_iter):
    """Solve A x = y (A Hermitian PD, dense [N,N]) with `num_iter` CG steps."""
    B, N = x_re.shape

    # Fused real-valued representation of the complex operator:
    #   [vr | vi] @ W == [Re(M v) | Im(M v)]   with  W = [[Mr^T, Mi^T],
    #                                                     [-Mi^T, Mr^T]]
    w = jnp.block([[m_re.T, m_im.T],
                   [-m_im.T, m_re.T]]).astype(jnp.float32)      # [2N, 2N]
    x_st = jnp.concatenate([x_re, x_im], axis=1)                # [B, 2N]
    y_st = jnp.concatenate([y_re, y_im], axis=1)                # [B, 2N]

    kernel = functools.partial(_cg_kernel, num_iter=num_iter)
    vmem = lambda: pl.BlockSpec(memory_space=pltpu.MemorySpace.VMEM)

    out = pl.pallas_call(
        kernel,
        out_shape=jax.ShapeDtypeStruct((B, 2 * N), jnp.float32),
        in_specs=[vmem(), vmem(), vmem()],
        out_specs=vmem(),
        input_output_aliases={1: 0},        # x buffer reused as output buffer
    )(w, x_st, y_st)

    return out[:, :N], out[:, N:]


# ------------------------ pure-JAX reference (complex) --------------------- #
def _cg_reference(M, x, y, num_iter):
    hi = jax.lax.Precision.HIGHEST
    A = lambda v: jnp.einsum('nk,bk->bn', M, v, precision=hi)
    zdot = lambda a, b: jnp.sum(jnp.conj(a) * b)
    r = y - A(x)
    rsold = jnp.real(zdot(r, r))
    p = r
    for _ in range(num_iter):
        Ap = A(p)
        pAp = zdot(p, Ap)
        alpha = rsold / pAp
        x = x + alpha * p
        r = r - alpha * Ap
        rsnew = jnp.real(zdot(r, r))
        beta = rsnew / rsold
        rsold = rsnew
        p = beta * p + r
    return x


# ---------------------------------- main ------------------------------------ #
if __name__ == "__main__":
    B, N = 2, 128          # 2 "images" of 128 (flattened) samples each
    NUM_ITER = 8

    key = jax.random.PRNGKey(0)
    k_gr, k_gi, k_xr, k_xi, k_yr, k_yi = jax.random.split(key, 6)

    # Deterministic Hermitian positive-definite operator  M = G^H G / N + I
    Gr = jax.random.normal(k_gr, (N, N), dtype=jnp.float32)
    Gi = jax.random.normal(k_gi, (N, N), dtype=jnp.float32)
    m_re = (Gr.T @ Gr + Gi.T @ Gi) / N + jnp.eye(N, dtype=jnp.float32)
    m_im = (Gr.T @ Gi - Gi.T @ Gr) / N

    # Initial guess x0 and right-hand side y (complex, as real/imag planes).
    x_re = 0.1 * jax.random.normal(k_xr, (B, N), dtype=jnp.float32)
    x_im = 0.1 * jax.random.normal(k_xi, (B, N), dtype=jnp.float32)
    y_re = jax.random.normal(k_yr, (B, N), dtype=jnp.float32)
    y_im = jax.random.normal(k_yi, (B, N), dtype=jnp.float32)

    out_re, out_im = conjugate_gradient(m_re, m_im, x_re, x_im, y_re, y_im,
                                        NUM_ITER)
    jax.block_until_ready((out_re, out_im))

    # Correctness check against a plain-JAX complex64 reference CG.
    M_c = (m_re + 1j * m_im).astype(jnp.complex64)
    x_c = (x_re + 1j * x_im).astype(jnp.complex64)
    y_c = (y_re + 1j * y_im).astype(jnp.complex64)
    ref = _cg_reference(M_c, x_c, y_c, NUM_ITER)
    assert jnp.allclose(out_re, jnp.real(ref), rtol=2e-2, atol=2e-2), "real mismatch"
    assert jnp.allclose(out_im, jnp.imag(ref), rtol=2e-2, atol=2e-2), "imag mismatch"

    # TODO(synk): dbprint (per-iteration residual printing) is not replicated
    # inside the kernel; it would need pl.debug_print + interpret/log-recorder.
    print("KERNEL_OK")
</pallas_src>

<mosaic_0001>
module attributes {stable_mosaic.version = 11 : i64} {
  func.func @_cg_kernel(%arg0: memref<256x256xf32, #tpu.memory_space<vmem>>, %arg1: memref<2x256xf32, #tpu.memory_space<vmem>>, %arg2: memref<2x256xf32, #tpu.memory_space<vmem>>, %arg3: memref<2x256xf32, #tpu.memory_space<vmem>>) attributes {dimension_semantics = [], scalar_prefetch = 0 : i64, scratch_operands = 0 : i64, tpu.core_type = #tpu.core_type<tc>} {
    %c0 = arith.constant 0 : index
    %c0_0 = arith.constant 0 : index
    %0 = vector.load %arg0[%c0, %c0_0] : memref<256x256xf32, #tpu.memory_space<vmem>>, vector<256x256xf32>
    %c0_1 = arith.constant 0 : index
    %c0_2 = arith.constant 0 : index
    %1 = vector.load %arg1[%c0_1, %c0_2] : memref<2x256xf32, #tpu.memory_space<vmem>>, vector<2x256xf32>
    %c0_3 = arith.constant 0 : index
    %c0_4 = arith.constant 0 : index
    %2 = vector.load %arg2[%c0_3, %c0_4] : memref<2x256xf32, #tpu.memory_space<vmem>>, vector<2x256xf32>
    %cst = arith.constant dense<0.000000e+00> : vector<2x256xf32>
    %3 = tpu.matmul %1, %0, %cst {dimension_numbers = #tpu.dot_dimension_numbers<[1], [0], [0], [1], [0, 0, 1, 1], [], []>} : vector<2x256xf32>, vector<256x256xf32>, vector<2x256xf32> -> vector<2x256xf32>
    %4 = arith.subf %2, %3 : vector<2x256xf32>
    %5 = arith.mulf %4, %4 : vector<2x256xf32>
    %6 = vector.shape_cast %5 : vector<2x256xf32> to vector<1x2x256xf32>
    %cst_5 = arith.constant dense<0.000000e+00> : vector<1xf32>
    %7 = vector.multi_reduction <add>, %6, %cst_5 [1, 2] : vector<1x2x256xf32> to vector<1xf32>
    %8 = vector.shape_cast %7 : vector<1xf32> to vector<1x1x1xf32>
    %9 = vector.extract %8[0, 0, 0] : f32 from vector<1x1x1xf32>
    %c0_i32 = arith.constant 0 : i32
    %cst_6 = arith.constant dense<0.000000e+00> : vector<2x256xf32>
    %10 = tpu.matmul %4, %0, %cst_6 {dimension_numbers = #tpu.dot_dimension_numbers<[1], [0], [0], [1], [0, 0, 1, 1], [], []>} : vector<2x256xf32>, vector<256x256xf32>, vector<2x256xf32> -> vector<2x256xf32>
    %11 = arith.mulf %4, %10 : vector<2x256xf32>
    %12 = vector.shape_cast %11 : vector<2x256xf32> to vector<1x2x256xf32>
    %cst_7 = arith.constant dense<0.000000e+00> : vector<1xf32>
    %13 = vector.multi_reduction <add>, %12, %cst_7 [1, 2] : vector<1x2x256xf32> to vector<1xf32>
    %14 = vector.shape_cast %13 : vector<1xf32> to vector<1x1x1xf32>
    %15 = vector.extract %14[0, 0, 0] : f32 from vector<1x1x1xf32>
    %16 = arith.divf %9, %15 : f32
    %17 = vector.broadcast %16 : f32 to vector<2x256xf32>
    %18 = arith.mulf %17, %4 : vector<2x256xf32>
    %19 = arith.addf %1, %18 : vector<2x256xf32>
    %20 = vector.broadcast %16 : f32 to vector<2x256xf32>
    %21 = arith.mulf %20, %10 : vector<2x256xf32>
    %22 = arith.subf %4, %21 : vector<2x256xf32>
    %23 = arith.mulf %22, %22 : vector<2x256xf32>
    %24 = vector.shape_cast %23 : vector<2x256xf32> to vector<1x2x256xf32>
    %cst_8 = arith.constant dense<0.000000e+00> : vector<1xf32>
    %25 = vector.multi_reduction <add>, %24, %cst_8 [1, 2] : vector<1x2x256xf32> to vector<1xf32>
    %26 = vector.shape_cast %25 : vector<1xf32> to vector<1x1x1xf32>
    %27 = vector.extract %26[0, 0, 0] : f32 from vector<1x1x1xf32>
    %28 = arith.divf %27, %9 : f32
    %29 = vector.broadcast %28 : f32 to vector<2x256xf32>
    %30 = arith.mulf %29, %4 : vector<2x256xf32>
    %31 = arith.addf %30, %22 : vector<2x256xf32>
    %c1_i32 = arith.constant 1 : i32
    %cst_9 = arith.constant dense<0.000000e+00> : vector<2x256xf32>
    %32 = tpu.matmul %31, %0, %cst_9 {dimension_numbers = #tpu.dot_dimension_numbers<[1], [0], [0], [1], [0, 0, 1, 1], [], []>} : vector<2x256xf32>, vector<256x256xf32>, vector<2x256xf32> -> vector<2x256xf32>
    %33 = arith.mulf %31, %32 : vector<2x256xf32>
    %34 = vector.shape_cast %33 : vector<2x256xf32> to vector<1x2x256xf32>
    %cst_10 = arith.constant dense<0.000000e+00> : vector<1xf32>
    %35 = vector.multi_reduction <add>, %34, %cst_10 [1, 2] : vector<1x2x256xf32> to vector<1xf32>
    %36 = vector.shape_cast %35 : vector<1xf32> to vector<1x1x1xf32>
    %37 = vector.extract %36[0, 0, 0] : f32 from vector<1x1x1xf32>
    %38 = arith.divf %27, %37 : f32
    %39 = vector.broadcast %38 : f32 to vector<2x256xf32>
    %40 = arith.mulf %39, %31 : vector<2x256xf32>
    %41 = arith.addf %19, %40 : vector<2x256xf32>
    %42 = vector.broadcast %38 : f32 to vector<2x256xf32>
    %43 = arith.mulf %42, %32 : vector<2x256xf32>
    %44 = arith.subf %22, %43 : vector<2x256xf32>
    %45 = arith.mulf %44, %44 : vector<2x256xf32>
    %46 = vector.shape_cast %45 : vector<2x256xf32> to vector<1x2x256xf32>
    %cst_11 = arith.constant dense<0.000000e+00> : vector<1xf32>
    %47 = vector.multi_reduction <add>, %46, %cst_11 [1, 2] : vector<1x2x256xf32> to vector<1xf32>
    %48 = vector.shape_cast %47 : vector<1xf32> to vector<1x1x1xf32>
    %49 = vector.extract %48[0, 0, 0] : f32 from vector<1x1x1xf32>
    %50 = arith.divf %49, %27 : f32
    %51 = vector.broadcast %50 : f32 to vector<2x256xf32>
    %52 = arith.mulf %51, %31 : vector<2x256xf32>
    %53 = arith.addf %52, %44 : vector<2x256xf32>
    %c2_i32 = arith.constant 2 : i32
    %cst_12 = arith.constant dense<0.000000e+00> : vector<2x256xf32>
    %54 = tpu.matmul %53, %0, %cst_12 {dimension_numbers = #tpu.dot_dimension_numbers<[1], [0], [0], [1], [0, 0, 1, 1], [], []>} : vector<2x256xf32>, vector<256x256xf32>, vector<2x256xf32> -> vector<2x256xf32>
    %55 = arith.mulf %53, %54 : vector<2x256xf32>
    %56 = vector.shape_cast %55 : vector<2x256xf32> to vector<1x2x256xf32>
    %cst_13 = arith.constant dense<0.000000e+00> : vector<1xf32>
    %57 = vector.multi_reduction <add>, %56, %cst_13 [1, 2] : vector<1x2x256xf32> to vector<1xf32>
    %58 = vector.shape_cast %57 : vector<1xf32> to vector<1x1x1xf32>
    %59 = vector.extract %58[0, 0, 0] : f32 from vector<1x1x1xf32>
    %60 = arith.divf %49, %59 : f32
    %61 = vector.broadcast %60 : f32 to vector<2x256xf32>
    %62 = arith.mulf %61, %53 : vector<2x256xf32>
    %63 = arith.addf %41, %62 : vector<2x256xf32>
    %64 = vector.broadcast %60 : f32 to vector<2x256xf32>
    %65 = arith.mulf %64, %54 : vector<2x256xf32>
    %66 = arith.subf %44, %65 : vector<2x256xf32>
    %67 = arith.mulf %66, %66 : vector<2x256xf32>
    %68 = vector.shape_cast %67 : vector<2x256xf32> to vector<1x2x256xf32>
    %cst_14 = arith.constant dense<0.000000e+00> : vector<1xf32>
    %69 = vector.multi_reduction <add>, %68, %cst_14 [1, 2] : vector<1x2x256xf32> to vector<1xf32>
    %70 = vector.shape_cast %69 : vector<1xf32> to vector<1x1x1xf32>
    %71 = vector.extract %70[0, 0, 0] : f32 from vector<1x1x1xf32>
    %72 = arith.divf %71, %49 : f32
    %73 = vector.broadcast %72 : f32 to vector<2x256xf32>
    %74 = arith.mulf %73, %53 : vector<2x256xf32>
    %75 = arith.addf %74, %66 : vector<2x256xf32>
    %c3_i32 = arith.constant 3 : i32
    %cst_15 = arith.constant dense<0.000000e+00> : vector<2x256xf32>
    %76 = tpu.matmul %75, %0, %cst_15 {dimension_numbers = #tpu.dot_dimension_numbers<[1], [0], [0], [1], [0, 0, 1, 1], [], []>} : vector<2x256xf32>, vector<256x256xf32>, vector<2x256xf32> -> vector<2x256xf32>
    %77 = arith.mulf %75, %76 : vector<2x256xf32>
    %78 = vector.shape_cast %77 : vector<2x256xf32> to vector<1x2x256xf32>
    %cst_16 = arith.constant dense<0.000000e+00> : vector<1xf32>
    %79 = vector.multi_reduction <add>, %78, %cst_16 [1, 2] : vector<1x2x256xf32> to vector<1xf32>
    %80 = vector.shape_cast %79 : vector<1xf32> to vector<1x1x1xf32>
    %81 = vector.extract %80[0, 0, 0] : f32 from vector<1x1x1xf32>
    %82 = arith.divf %71, %81 : f32
    %83 = vector.broadcast %82 : f32 to vector<2x256xf32>
    %84 = arith.mulf %83, %75 : vector<2x256xf32>
    %85 = arith.addf %63, %84 : vector<2x256xf32>
    %86 = vector.broadcast %82 : f32 to vector<2x256xf32>
    %87 = arith.mulf %86, %76 : vector<2x256xf32>
    %88 = arith.subf %66, %87 : vector<2x256xf32>
    %89 = arith.mulf %88, %88 : vector<2x256xf32>
    %90 = vector.shape_cast %89 : vector<2x256xf32> to vector<1x2x256xf32>
    %cst_17 = arith.constant dense<0.000000e+00> : vector<1xf32>
    %91 = vector.multi_reduction <add>, %90, %cst_17 [1, 2] : vector<1x2x256xf32> to vector<1xf32>
    %92 = vector.shape_cast %91 : vector<1xf32> to vector<1x1x1xf32>
    %93 = vector.extract %92[0, 0, 0] : f32 from vector<1x1x1xf32>
    %94 = arith.divf %93, %71 : f32
    %95 = vector.broadcast %94 : f32 to vector<2x256xf32>
    %96 = arith.mulf %95, %75 : vector<2x256xf32>
    %97 = arith.addf %96, %88 : vector<2x256xf32>
    %c4_i32 = arith.constant 4 : i32
    %cst_18 = arith.constant dense<0.000000e+00> : vector<2x256xf32>
    %98 = tpu.matmul %97, %0, %cst_18 {dimension_numbers = #tpu.dot_dimension_numbers<[1], [0], [0], [1], [0, 0, 1, 1], [], []>} : vector<2x256xf32>, vector<256x256xf32>, vector<2x256xf32> -> vector<2x256xf32>
    %99 = arith.mulf %97, %98 : vector<2x256xf32>
    %100 = vector.shape_cast %99 : vector<2x256xf32> to vector<1x2x256xf32>
    %cst_19 = arith.constant dense<0.000000e+00> : vector<1xf32>
    %101 = vector.multi_reduction <add>, %100, %cst_19 [1, 2] : vector<1x2x256xf32> to vector<1xf32>
    %102 = vector.shape_cast %101 : vector<1xf32> to vector<1x1x1xf32>
    %103 = vector.extract %102[0, 0, 0] : f32 from vector<1x1x1xf32>
    %104 = arith.divf %93, %103 : f32
    %105 = vector.broadcast %104 : f32 to vector<2x256xf32>
    %106 = arith.mulf %105, %97 : vector<2x256xf32>
    %107 = arith.addf %85, %106 : vector<2x256xf32>
    %108 = vector.broadcast %104 : f32 to vector<2x256xf32>
    %109 = arith.mulf %108, %98 : vector<2x256xf32>
    %110 = arith.subf %88, %109 : vector<2x256xf32>
    %111 = arith.mulf %110, %110 : vector<2x256xf32>
    %112 = vector.shape_cast %111 : vector<2x256xf32> to vector<1x2x256xf32>
    %cst_20 = arith.constant dense<0.000000e+00> : vector<1xf32>
    %113 = vector.multi_reduction <add>, %112, %cst_20 [1, 2] : vector<1x2x256xf32> to vector<1xf32>
    %114 = vector.shape_cast %113 : vector<1xf32> to vector<1x1x1xf32>
    %115 = vector.extract %114[0, 0, 0] : f32 from vector<1x1x1xf32>
    %116 = arith.divf %115, %93 : f32
    %117 = vector.broadcast %116 : f32 to vector<2x256xf32>
    %118 = arith.mulf %117, %97 : vector<2x256xf32>
    %119 = arith.addf %118, %110 : vector<2x256xf32>
    %c5_i32 = arith.constant 5 : i32
    %cst_21 = arith.constant dense<0.000000e+00> : vector<2x256xf32>
    %120 = tpu.matmul %119, %0, %cst_21 {dimension_numbers = #tpu.dot_dimension_numbers<[1], [0], [0], [1], [0, 0, 1, 1], [], []>} : vector<2x256xf32>, vector<256x256xf32>, vector<2x256xf32> -> vector<2x256xf32>
    %121 = arith.mulf %119, %120 : vector<2x256xf32>
    %122 = vector.shape_cast %121 : vector<2x256xf32> to vector<1x2x256xf32>
    %cst_22 = arith.constant dense<0.000000e+00> : vector<1xf32>
    %123 = vector.multi_reduction <add>, %122, %cst_22 [1, 2] : vector<1x2x256xf32> to vector<1xf32>
    %124 = vector.shape_cast %123 : vector<1xf32> to vector<1x1x1xf32>
    %125 = vector.extract %124[0, 0, 0] : f32 from vector<1x1x1xf32>
    %126 = arith.divf %115, %125 : f32
    %127 = vector.broadcast %126 : f32 to vector<2x256xf32>
    %128 = arith.mulf %127, %119 : vector<2x256xf32>
    %129 = arith.addf %107, %128 : vector<2x256xf32>
    %130 = vector.broadcast %126 : f32 to vector<2x256xf32>
    %131 = arith.mulf %130, %120 : vector<2x256xf32>
    %132 = arith.subf %110, %131 : vector<2x256xf32>
    %133 = arith.mulf %132, %132 : vector<2x256xf32>
    %134 = vector.shape_cast %133 : vector<2x256xf32> to vector<1x2x256xf32>
    %cst_23 = arith.constant dense<0.000000e+00> : vector<1xf32>
    %135 = vector.multi_reduction <add>, %134, %cst_23 [1, 2] : vector<1x2x256xf32> to vector<1xf32>
    %136 = vector.shape_cast %135 : vector<1xf32> to vector<1x1x1xf32>
    %137 = vector.extract %136[0, 0, 0] : f32 from vector<1x1x1xf32>
    %138 = arith.divf %137, %115 : f32
    %139 = vector.broadcast %138 : f32 to vector<2x256xf32>
    %140 = arith.mulf %139, %119 : vector<2x256xf32>
    %141 = arith.addf %140, %132 : vector<2x256xf32>
    %c6_i32 = arith.constant 6 : i32
    %cst_24 = arith.constant dense<0.000000e+00> : vector<2x256xf32>
    %142 = tpu.matmul %141, %0, %cst_24 {dimension_numbers = #tpu.dot_dimension_numbers<[1], [0], [0], [1], [0, 0, 1, 1], [], []>} : vector<2x256xf32>, vector<256x256xf32>, vector<2x256xf32> -> vector<2x256xf32>
    %143 = arith.mulf %141, %142 : vector<2x256xf32>
    %144 = vector.shape_cast %143 : vector<2x256xf32> to vector<1x2x256xf32>
    %cst_25 = arith.constant dense<0.000000e+00> : vector<1xf32>
    %145 = vector.multi_reduction <add>, %144, %cst_25 [1, 2] : vector<1x2x256xf32> to vector<1xf32>
    %146 = vector.shape_cast %145 : vector<1xf32> to vector<1x1x1xf32>
    %147 = vector.extract %146[0, 0, 0] : f32 from vector<1x1x1xf32>
    %148 = arith.divf %137, %147 : f32
    %149 = vector.broadcast %148 : f32 to vector<2x256xf32>
    %150 = arith.mulf %149, %141 : vector<2x256xf32>
    %151 = arith.addf %129, %150 : vector<2x256xf32>
    %152 = vector.broadcast %148 : f32 to vector<2x256xf32>
    %153 = arith.mulf %152, %142 : vector<2x256xf32>
    %154 = arith.subf %132, %153 : vector<2x256xf32>
    %155 = arith.mulf %154, %154 : vector<2x256xf32>
    %156 = vector.shape_cast %155 : vector<2x256xf32> to vector<1x2x256xf32>
    %cst_26 = arith.constant dense<0.000000e+00> : vector<1xf32>
    %157 = vector.multi_reduction <add>, %156, %cst_26 [1, 2] : vector<1x2x256xf32> to vector<1xf32>
    %158 = vector.shape_cast %157 : vector<1xf32> to vector<1x1x1xf32>
    %159 = vector.extract %158[0, 0, 0] : f32 from vector<1x1x1xf32>
    %160 = arith.divf %159, %137 : f32
    %161 = vector.broadcast %160 : f32 to vector<2x256xf32>
    %162 = arith.mulf %161, %141 : vector<2x256xf32>
    %163 = arith.addf %162, %154 : vector<2x256xf32>
    %c7_i32 = arith.constant 7 : i32
    %cst_27 = arith.constant dense<0.000000e+00> : vector<2x256xf32>
    %164 = tpu.matmul %163, %0, %cst_27 {dimension_numbers = #tpu.dot_dimension_numbers<[1], [0], [0], [1], [0, 0, 1, 1], [], []>} : vector<2x256xf32>, vector<256x256xf32>, vector<2x256xf32> -> vector<2x256xf32>
    %165 = arith.mulf %163, %164 : vector<2x256xf32>
    %166 = vector.shape_cast %165 : vector<2x256xf32> to vector<1x2x256xf32>
    %cst_28 = arith.constant dense<0.000000e+00> : vector<1xf32>
    %167 = vector.multi_reduction <add>, %166, %cst_28 [1, 2] : vector<1x2x256xf32> to vector<1xf32>
    %168 = vector.shape_cast %167 : vector<1xf32> to vector<1x1x1xf32>
    %169 = vector.extract %168[0, 0, 0] : f32 from vector<1x1x1xf32>
    %170 = arith.divf %159, %169 : f32
    %171 = vector.broadcast %170 : f32 to vector<2x256xf32>
    %172 = arith.mulf %171, %163 : vector<2x256xf32>
    %173 = arith.addf %151, %172 : vector<2x256xf32>
    %174 = vector.broadcast %170 : f32 to vector<2x256xf32>
    %175 = arith.mulf %174, %164 : vector<2x256xf32>
    %176 = arith.subf %154, %175 : vector<2x256xf32>
    %177 = arith.mulf %176, %176 : vector<2x256xf32>
    %178 = vector.shape_cast %177 : vector<2x256xf32> to vector<1x2x256xf32>
    %cst_29 = arith.constant dense<0.000000e+00> : vector<1xf32>
    %179 = vector.multi_reduction <add>, %178, %cst_29 [1, 2] : vector<1x2x256xf32> to vector<1xf32>
    %180 = vector.shape_cast %179 : vector<1xf32> to vector<1x1x1xf32>
    %181 = vector.extract %180[0, 0, 0] : f32 from vector<1x1x1xf32>
    %182 = arith.divf %181, %159 : f32
    %183 = vector.broadcast %182 : f32 to vector<2x256xf32>
    %184 = arith.mulf %183, %163 : vector<2x256xf32>
    %185 = arith.addf %184, %176 : vector<2x256xf32>
    %c0_30 = arith.constant 0 : index
    %c0_31 = arith.constant 0 : index
    %186 = vector.load %arg3[%c0_30, %c0_31] : memref<2x256xf32, #tpu.memory_space<vmem>>, vector<2x256xf32>
    tpu.vector_store %arg3[%c0_30, %c0_31], %173 {strides = array<i32>} : memref<2x256xf32, #tpu.memory_space<vmem>>, vector<2x256xf32>,
    return
  }
}

</mosaic_0001>

<bundles_post_ra>
// kernel: tpu_custom_call.1
= control target key start
LH: loop header
LB: loop body
LE: loop exit
PB: predicated region body
PF: predicated region fallthrough
CT: control target
= control target key end

     0   :  { %8 = vsyncpa [#allocation3], 0  ;;  %s2929_s0 = inlined_call_operand.hbm [shape: f32[256,256], index: 0, kind: input, shape index: {}]   ;;  %s2930_s1 = inlined_call_operand.hbm [shape: f32[2,256], index: 1, kind: input, shape index: {}, may-alias: {1,3}]   ;;  %s2931_s2 = inlined_call_operand.vmem [shape: f32[2,256], index: 2, kind: input, shape index: {}]   ;;  %s2932_s3 = inlined_call_operand.hbm [shape: f32[2,256], index: 3, kind: output, shape index: {}, may-alias: {1,3}]  }
   0x1   :  { %9 = vsyncpa [#allocation6], 0 }
   0x2   :  { %10 = vsyncpa [#allocation4], 0  ;;  %s2296_s12 = smov [#allocation2]   ;;  %s2224_s16 = scalar_lea.hbm %s2929_s0, 8192 }
   0x3   :  { %s16_s13 = sshll.u32 %s2296_s12, 4  ;;  %p2225_p0 = scmp.ne.s32.totalorder %s2929_s0, %s2224_s16  ;;  %s17_s13 = int_to_ptr.vmem [resolvable:$true] %s16_s13 }
   0x4   :  { %p2228_p1 = scmp.lt.u32.totalorder %s2224_s16, %s2929_s0 }
   0x6   :  { %p2230_p2 = pnand %p2228_p1, %p2225_p0 }
   0x8   :  { %2233 = shalt.err (!%p2230_p2)
}
   0x9   :  { %s2234_s21 = scalar_lea.vmem %s17_s13, 8192  ;;  %p2239_p4 = scmp.lt.s32.totalorder %s17_s13, %s17_s13 }
   0xa   :  { %p2235_p3 = scmp.ne.s32.totalorder %s17_s13, %s2234_s21  ;;  %p2240_p5 = scmp.lt.s32.totalorder %s2234_s21, %s2234_s21 }
   0xc   :  { %p2241_p6 = por %p2240_p5, %p2239_p4 }
   0xe   :  { %p2242_p7 = pnand %p2241_p6, %p2235_p3 }
  0x10   :  { %2245 = shalt.err (!%p2242_p7)
}
  0x11   :  { %s2297_s22 = smov 256   ;;  %s2298_s23 = smov 16  }
  0x12   :  { %22 = dma.hbm_to_vmem [thread:$0]  %s2929_s0, 8192, %s17_s13, [#allocation3], %s2297_s22, %s2297_s22, %s2298_s23  }
  0x13   :  { %s2299_s26 = smov [#allocation5]   ;;  %s2246_s30 = scalar_lea.hbm %s2930_s1, 64 }
  0x14   :  { %s29_s27 = sshll.u32 %s2299_s26, 4  ;;  %p2247_p8 = scmp.ne.s32.totalorder %s2930_s1, %s2246_s30  ;;  %s30_s27 = int_to_ptr.vmem [resolvable:$true] %s29_s27 }
  0x15   :  { %p2250_p9 = scmp.lt.u32.totalorder %s2246_s30, %s2930_s1 }
  0x17   :  { %p2252_p10 = pnand %p2250_p9, %p2247_p8 }
  0x19   :  { %2255 = shalt.err (!%p2252_p10)
}
  0x1a   :  { %s2256_s8 = scalar_lea.vmem %s30_s27, 64  ;;  %p2261_p12 = scmp.lt.s32.totalorder %s30_s27, %s30_s27 }
  0x1b   :  { %p2257_p11 = scmp.ne.s32.totalorder %s30_s27, %s2256_s8  ;;  %p2262_p13 = scmp.lt.s32.totalorder %s2256_s8, %s2256_s8 }
  0x1d   :  { %p2263_p0 = por %p2262_p13, %p2261_p12 }
  0x1f   :  { %p2264_p1 = pnand %p2263_p0, %p2257_p11 }
  0x21   :  { %2267 = shalt.err (!%p2264_p1)
}
  0x22   :  { %32 = dma.hbm_to_vmem [thread:$0]  %s2930_s1, 64, %s30_s27, [#allocation6]  }
  0x23   :  { %2290 = dma.done.wait [#allocation3], 8192  }
  0x24   :  { %2291 = vsyncadd [#allocation3], 4294959104 }
  0x25   :  { %2292 = dma.done.wait [#allocation6], 64  }
  0x26   :  { %2293 = vsyncadd [#allocation6], 4294967232  ;;  %v42_v0 = vld [vmem:[#allocation2 + $0x8] sm:$0xff]  ;;  %v44_v1 = vld [vmem:[#allocation2 + $0x18] sm:$0xff]  ;;  %v2300_v25 = vmov 1983009808   ;;  %v111_v27 = vlaneseq }
  0x27   :  { %v41_v2 = vld [vmem:[#allocation2] sm:$0xff]  ;;  %v2346_v3 = vpack.c.bf16 %v44_v1, %v42_v0  ;;  %v43_v4 = vld [vmem:[#allocation2 + $0x10] sm:$0xff]  ;;  %v46_v5 = vld [vmem:[#allocation2 + $0x28] sm:$0xff]  ;;  %v109_v26 = vunpack.c.l.s4 %v2300_v25  ;;  %vm213_vm0 = vcmask 1041408  }
  0x28   :  { %v48_v6 = vld [vmem:[#allocation2 + $0x38] sm:$0xff]  ;;  %v2348_v7 = vpack.c.bf16 %v43_v4, %v41_v2  ;;  %v45_v9 = vld [vmem:[#allocation2 + $0x20] sm:$0xff]  ;;  %v47_v10 = vld [vmem:[#allocation2 + $0x30] sm:$0xff]  ;;  %v112_v35 = vshrl.u32 %v111_v27, 7 }
  0x29   :  { %v2350_v8 = vpack.c.bf16 %v48_v6, %v46_v5  ;;  %v50_v11 = vld [vmem:[#allocation2 + $0x48] sm:$0xff]  ;;  %1551 = vmatprep.subr.bf16.mxu0 %v2346_v3  ;;  %v52_v12 = vld [vmem:[#allocation2 + $0x58] sm:$0xff]  ;;  %1615 = vmatprep.subr.bf16.mxu1 %v2346_v3  ;;  %v2355_v13 = vpack.c.bf16 %v47_v10, %v45_v9  ;;  %v49_v15 = vld [vmem:[#allocation2 + $0x40] sm:$0xff]  ;;  %v110_v34 = vunpack.c.0.s8 %v109_v26 }
  0x2a   :  { %1553 = vmatpush1.bf16.msra.mxu0 %v2348_v7  ;;  %1617 = vmatpush1.bf16.msra.mxu1 %v2348_v7  ;;  %v2359_v14 = vpack.c.bf16 %v52_v12, %v50_v11  ;;  %v51_v16 = vld [vmem:[#allocation2 + $0x50] sm:$0xff]  ;;  %v54_v17 = vld [vmem:[#allocation2 + $0x68] sm:$0xff]  ;;  %v56_v18 = vld [vmem:[#allocation2 + $0x78] sm:$0xff] }
  0x2b   :  { %1555 = vmatprep.subr.bf16.mxu0 %v2350_v8  ;;  %1619 = vmatprep.subr.bf16.mxu1 %v2350_v8  ;;  %v2363_v19 = vpack.c.bf16 %v51_v16, %v49_v15  ;;  %v2367_v20 = vpack.c.bf16 %v56_v18, %v54_v17  ;;  %v53_v21 = vld [vmem:[#allocation2 + $0x60] sm:$0xff]  ;;  %v55_v22 = vld [vmem:[#allocation2 + $0x70] sm:$0xff]  ;;  %v58_v23 = vld [vmem:[#allocation2 + $0x88] sm:$0xff]  ;;  %v2386_v42 = vsub.s32 %v110_v34, %v112_v35 }
  0x2c   :  { %v60_v24 = vld [vmem:[#allocation2 + $0x98] sm:$0xff]  ;;  %v2371_v28 = vpack.c.bf16 %v55_v22, %v53_v21  ;;  %v57_v30 = vld [vmem:[#allocation2 + $0x80] sm:$0xff]  ;;  %v59_v31 = vld [vmem:[#allocation2 + $0x90] sm:$0xff] }
  0x2d   :  { %v2375_v29 = vpack.c.bf16 %v60_v24, %v58_v23  ;;  %v62_v32 = vld [vmem:[#allocation2 + $0xa8] sm:$0xff]  ;;  %v64_v33 = vld [vmem:[#allocation2 + $0xb8] sm:$0xff]  ;;  %v2379_v36 = vpack.c.bf16 %v59_v31, %v57_v30  ;;  %v61_v38 = vld [vmem:[#allocation2 + $0xa0] sm:$0xff] }
  0x2e   :  { %1557 = vmatpush1.bf16.msra.mxu0 %v2355_v13  ;;  %1621 = vmatpush1.bf16.msra.mxu1 %v2355_v13  ;;  %v2383_v37 = vpack.c.bf16 %v64_v33, %v62_v32  ;;  %v63_v39 = vld [vmem:[#allocation2 + $0xb0] sm:$0xff]  ;;  %v66_v40 = vld [vmem:[#allocation2 + $0xc8] sm:$0xff]  ;;  %v68_v41 = vld [vmem:[#allocation2 + $0xd8] sm:$0xff] }
  0x2f   :  { %1559 = vmatprep.subr.bf16.mxu0 %v2359_v14  ;;  %1623 = vmatprep.subr.bf16.mxu1 %v2359_v14  ;;  %v2389_v43 = vpack.c.bf16 %v63_v39, %v61_v38  ;;  %v2393_v44 = vpack.c.bf16 %v68_v41, %v66_v40  ;;  %v65_v45 = vld [vmem:[#allocation2 + $0xc0] sm:$0xff]  ;;  %v67_v46 = vld [vmem:[#allocation2 + $0xd0] sm:$0xff]  ;;  %v70_v48 = vld [vmem:[#allocation2 + $0xe8] sm:$0xff] }
  0x30   :  { %v2395_v47 = vld [vmem:[#allocation5] sm:$0xf]  ;;  %v72_v49 = vld [vmem:[#allocation2 + $0xf8] sm:$0xff]  ;;  %v2403_v51 = vpack.c.bf16 %v67_v46, %v65_v45  ;;  %v71_v55 = vld [vmem:[#allocation2 + $0xf0] sm:$0xff] }
  0x31   :  { %v2400_v50 = vrot.slane %v2395_v47, %v2386_v42  ;;  %v2409_v53 = vpack.c.bf16 %v72_v49, %v70_v48  ;;  %v69_v54 = vld [vmem:[#allocation2 + $0xe0] sm:$0xff]  ;;  %v74_v56 = vld [vmem:[#allocation2 + $0x108] sm:$0xff]  ;;  %v76_v57 = vld [vmem:[#allocation2 + $0x118] sm:$0xff] }
  0x32   :  { %1561 = vmatpush1.bf16.msra.mxu0 %v2363_v19  ;;  %1625 = vmatpush1.bf16.msra.mxu1 %v2363_v19  ;;  %v2413_v58 = vpack.c.bf16 %v71_v55, %v69_v54  ;;  %v2417_v59 = vpack.c.bf16 %v76_v57, %v74_v56  ;;  %v73_v60 = vld [vmem:[#allocation2 + $0x100] sm:$0xff]  ;;  %v75_v61 = vld [vmem:[#allocation2 + $0x110] sm:$0xff]  ;;  %v78_v62 = vld [vmem:[#allocation2 + $0x128] sm:$0xff] }
  0x33   :  { %1563 = vmatprep.subr.bf16.mxu0 %v2367_v20  ;;  %1627 = vmatprep.subr.bf16.mxu1 %v2367_v20  ;;  %v115_v52 = vcombine.high %v2400_v50, %v2400_v50  ;;  %v80_v63 = vld [vmem:[#allocation2 + $0x138] sm:$0xff]  ;;  %v2421_v0 = vpack.c.bf16 %v75_v61, %v73_v60  ;;  %v77_v2 = vld [vmem:[#allocation2 + $0x120] sm:$0xff]  ;;  %v79_v4 = vld [vmem:[#allocation2 + $0x130] sm:$0xff] }
  0x34   :  { %v2425_v1 = vpack.c.bf16 %v80_v63, %v78_v62  ;;  %v82_v5 = vld [vmem:[#allocation2 + $0x148] sm:$0xff]  ;;  %v84_v6 = vld [vmem:[#allocation2 + $0x158] sm:$0xff]  ;;  %v2429_v9 = vpack.c.bf16 %v79_v4, %v77_v2  ;;  %v81_v11 = vld [vmem:[#allocation2 + $0x140] sm:$0xff] }
  0x35   :  { %182 = vmatprep.mubr.f32.mxu0 %v115_v52  ;;  %v2433_v10 = vpack.c.bf16 %v84_v6, %v82_v5  ;;  %v83_v12 = vld [vmem:[#allocation2 + $0x150] sm:$0xff]  ;;  %v86_v15 = vld [vmem:[#allocation2 + $0x168] sm:$0xff]  ;;  %v88_v16 = vld [vmem:[#allocation2 + $0x178] sm:$0xff] }
  0x36   :  { %1565 = vmatpush1.bf16.msra.mxu0 %v2371_v28  ;;  %1629 = vmatpush1.bf16.msra.mxu1 %v2371_v28  ;;  %v2437_v17 = vpack.c.bf16 %v83_v12, %v81_v11  ;;  %v2441_v18 = vpack.c.bf16 %v88_v16, %v86_v15  ;;  %v85_v21 = vld [vmem:[#allocation2 + $0x160] sm:$0xff]  ;;  %v87_v22 = vld [vmem:[#allocation2 + $0x170] sm:$0xff]  ;;  %v90_v23 = vld [vmem:[#allocation2 + $0x188] sm:$0xff] }
  0x37   :  { %1567 = vmatprep.subr.bf16.mxu0 %v2375_v29  ;;  %1631 = vmatprep.subr.bf16.mxu1 %v2375_v29  ;;  %v92_v24 = vld [vmem:[#allocation2 + $0x198] sm:$0xff]  ;;  %v2445_v25 = vpack.c.bf16 %v87_v22, %v85_v21  ;;  %v89_v27 = vld [vmem:[#allocation2 + $0x180] sm:$0xff]  ;;  %v91_v30 = vld [vmem:[#allocation2 + $0x190] sm:$0xff] }
  0x38   :  { %v2449_v26 = vpack.c.bf16 %v92_v24, %v90_v23  ;;  %v94_v31 = vld [vmem:[#allocation2 + $0x1a8] sm:$0xff]  ;;  %v96_v32 = vld [vmem:[#allocation2 + $0x1b8] sm:$0xff]  ;;  %v2453_v33 = vpack.c.bf16 %v91_v30, %v89_v27  ;;  %v93_v35 = vld [vmem:[#allocation2 + $0x1a0] sm:$0xff] }
  0x39   :  { %v2457_v34 = vpack.c.bf16 %v96_v32, %v94_v31  ;;  %v95_v38 = vld [vmem:[#allocation2 + $0x1b0] sm:$0xff]  ;;  %v98_v39 = vld [vmem:[#allocation2 + $0x1c8] sm:$0xff]  ;;  %v100_v40 = vld [vmem:[#allocation2 + $0x1d8] sm:$0xff] }
  0x3a   :  { %1569 = vmatpush1.bf16.msra.mxu0 %v2379_v36  ;;  %1633 = vmatpush1.bf16.msra.mxu1 %v2379_v36  ;;  %v2461_v41 = vpack.c.bf16 %v95_v38, %v93_v35  ;;  %v2465_v45 = vpack.c.bf16 %v100_v40, %v98_v39  ;;  %v97_v46 = vld [vmem:[#allocation2 + $0x1c0] sm:$0xff]  ;;  %v99_v48 = vld [vmem:[#allocation2 + $0x1d0] sm:$0xff]  ;;  %v102_v49 = vld [vmem:[#allocation2 + $0x1e8] sm:$0xff] }
  0x3b   :  { %1571 = vmatprep.subr.bf16.mxu0 %v2383_v37  ;;  %1635 = vmatprep.subr.bf16.mxu1 %v2383_v37  ;;  %v104_v52 = vld [vmem:[#allocation2 + $0x1f8] sm:$0xff]  ;;  %v2469_v54 = vpack.c.bf16 %v99_v48, %v97_v46  ;;  %v101_v56 = vld [vmem:[#allocation2 + $0x1e0] sm:$0xff]  ;;  %v103_v57 = vld [vmem:[#allocation2 + $0x1f0] sm:$0xff] }
  0x3c   :  { %v2473_v55 = vpack.c.bf16 %v104_v52, %v102_v49  ;;  %v2477_v60 = vpack.c.bf16 %v103_v57, %v101_v56  ;;  %v106_v63 = vld [vmem:[%s2931_s2] sm:$0xf] }
  0x3e   :  { %1573 = vmatpush1.bf16.msra.mxu0 %v2389_v43  ;;  %1637 = vmatpush1.bf16.msra.mxu1 %v2389_v43 }
  0x3f   :  { %1575 = vmatprep.subr.bf16.mxu0 %v2393_v44  ;;  %1639 = vmatprep.subr.bf16.mxu1 %v2393_v44 }
  0x42   :  { %1577 = vmatpush1.bf16.msra.mxu0 %v2403_v51  ;;  %1641 = vmatpush1.bf16.msra.mxu1 %v2403_v51 }
  0x43   :  { %1579 = vmatprep.subr.bf16.mxu0 %v2409_v53  ;;  %1643 = vmatprep.subr.bf16.mxu1 %v2409_v53 }
  0x46   :  { %1581 = vmatpush1.bf16.msra.mxu0 %v2413_v58  ;;  %1645 = vmatpush1.bf16.msra.mxu1 %v2413_v58 }
  0x47   :  { %1583 = vmatprep.subr.bf16.mxu0 %v2417_v59  ;;  %1647 = vmatprep.subr.bf16.mxu1 %v2417_v59 }
  0x4a   :  { %1585 = vmatpush1.bf16.msra.mxu0 %v2421_v0  ;;  %1649 = vmatpush1.bf16.msra.mxu1 %v2421_v0 }
  0x4b   :  { %1587 = vmatprep.subr.bf16.mxu0 %v2425_v1  ;;  %1651 = vmatprep.subr.bf16.mxu1 %v2425_v1 }
  0x4e   :  { %1589 = vmatpush1.bf16.msra.mxu0 %v2429_v9  ;;  %1653 = vmatpush1.bf16.msra.mxu1 %v2429_v9 }
  0x4f   :  { %1591 = vmatprep.subr.bf16.mxu0 %v2433_v10  ;;  %1655 = vmatprep.subr.bf16.mxu1 %v2433_v10 }
  0x52   :  { %1593 = vmatpush1.bf16.msra.mxu0 %v2437_v17  ;;  %1657 = vmatpush1.bf16.msra.mxu1 %v2437_v17 }
  0x53   :  { %1595 = vmatprep.subr.bf16.mxu0 %v2441_v18  ;;  %1659 = vmatprep.subr.bf16.mxu1 %v2441_v18 }
  0x56   :  { %1597 = vmatpush1.bf16.msra.mxu0 %v2445_v25  ;;  %1661 = vmatpush1.bf16.msra.mxu1 %v2445_v25 }
  0x57   :  { %1599 = vmatprep.subr.bf16.mxu0 %v2449_v26  ;;  %1663 = vmatprep.subr.bf16.mxu1 %v2449_v26 }
  0x5a   :  { %1601 = vmatpush1.bf16.msra.mxu0 %v2453_v33  ;;  %1665 = vmatpush1.bf16.msra.mxu1 %v2453_v33 }
  0x5b   :  { %1603 = vmatprep.subr.bf16.mxu0 %v2457_v34  ;;  %1667 = vmatprep.subr.bf16.mxu1 %v2457_v34 }
  0x5e   :  { %1605 = vmatpush1.bf16.msra.mxu0 %v2461_v41  ;;  %1669 = vmatpush1.bf16.msra.mxu1 %v2461_v41 }
  0x5f   :  { %1607 = vmatprep.subr.bf16.mxu0 %v2465_v45  ;;  %1671 = vmatprep.subr.bf16.mxu1 %v2465_v45 }
  0x62   :  { %1609 = vmatpush1.bf16.msra.mxu0 %v2469_v54  ;;  %1673 = vmatpush1.bf16.msra.mxu1 %v2469_v54 }
  0x63   :  { %1611 = vmatprep.subr.bf16.mxu0 %v2473_v55  ;;  %1675 = vmatprep.subr.bf16.mxu1 %v2473_v55 }
  0x66   :  { %1613 = vmatpush1.bf16.msra.mxu0 %v2477_v60  ;;  %1677 = vmatpush1.bf16.msra.mxu1 %v2477_v60 }
  0x67   :  { %1679 = vmatprep.subr.bf16.mxu0 %v2346_v3  ;;  %1743 = vmatprep.subr.bf16.mxu1 %v2346_v3 }
  0x69   :  { %183 = vmatmul.mubr.f32.vlgmr.msra.gmra.mrb[0].mxu0 %v2400_v50 }
  0x6a   :  { %1681 = vmatpush1.bf16.msra.mxu0 %v2348_v7 }
  0x6b   :  { %1683 = vmatprep.subr.bf16.mxu0 %v2350_v8 }
  0x6e   :  { %1685 = vmatpush1.bf16.msra.mxu0 %v2355_v13 }
  0x6f   :  { %1687 = vmatprep.subr.bf16.mxu0 %v2359_v14 }
  0x72   :  { %1689 = vmatpush1.bf16.msra.mxu0 %v2363_v19 }
  0x73   :  { %1691 = vmatprep.subr.bf16.mxu0 %v2367_v20 }
  0x76   :  { %1693 = vmatpush1.bf16.msra.mxu0 %v2371_v28 }
  0x77   :  { %1695 = vmatprep.subr.bf16.mxu0 %v2375_v29 }
  0x7a   :  { %1697 = vmatpush1.bf16.msra.mxu0 %v2379_v36 }
  0x7b   :  { %1699 = vmatprep.subr.bf16.mxu0 %v2383_v37 }
  0x7e   :  { %1701 = vmatpush1.bf16.msra.mxu0 %v2389_v43 }
  0x7f   :  { %1703 = vmatprep.subr.bf16.mxu0 %v2393_v44 }
  0x82   :  { %1705 = vmatpush1.bf16.msra.mxu0 %v2403_v51 }
  0x83   :  { %1707 = vmatprep.subr.bf16.mxu0 %v2409_v53 }
  0x86   :  { %1709 = vmatpush1.bf16.msra.mxu0 %v2413_v58 }
  0x87   :  { %1711 = vmatprep.subr.bf16.mxu0 %v2417_v59 }
  0x8a   :  { %1713 = vmatpush1.bf16.msra.mxu0 %v2421_v0 }
  0x8b   :  { %1715 = vmatprep.subr.bf16.mxu0 %v2425_v1 }
  0x8e   :  { %1717 = vmatpush1.bf16.msra.mxu0 %v2429_v9 }
  0x8f   :  { %1719 = vmatprep.subr.bf16.mxu0 %v2433_v10 }
  0x92   :  { %1721 = vmatpush1.bf16.msra.mxu0 %v2437_v17 }
  0x93   :  { %1723 = vmatprep.subr.bf16.mxu0 %v2441_v18 }
  0x96   :  { %1725 = vmatpush1.bf16.msra.mxu0 %v2445_v25 }
  0x97   :  { %1727 = vmatprep.subr.bf16.mxu0 %v2449_v26 }
  0x9a   :  { %1729 = vmatpush1.bf16.msra.mxu0 %v2453_v33 }
  0x9b   :  { %1731 = vmatprep.subr.bf16.mxu0 %v2457_v34 }
  0x9e   :  { %1733 = vmatpush1.bf16.msra.mxu0 %v2461_v41 }
  0x9f   :  { %1735 = vmatprep.subr.bf16.mxu0 %v2465_v45 }
  0xa2   :  { %1737 = vmatpush1.bf16.msra.mxu0 %v2469_v54 }
  0xa3   :  { %1739 = vmatprep.subr.bf16.mxu0 %v2473_v55 }
  0xa6   :  { %1741 = vmatpush1.bf16.msra.mxu0 %v2477_v60 }
  0xa7   :  { %1807 = vmatprep.subr.bf16.mxu0 %v2346_v3 }
 0x13c   :  { %v184_v50 = vpop.f32.mrb[0].mxu0 }
 0x13d   :  { %v186_v61 = vpop.f32.mrb[1].mxu0 }
 0x13e   :  { %v191_v62 = vcombine.low %v184_v50, %v186_v61 }
 0x140   :  { %v198_v2 = vrot.slane %v191_v62, %v2386_v42 }
 0x142   :  { %v2523_v4 = vsub.f32 %v106_v63, %v198_v2 }
 0x144   :  { %v233_v5 = vrot.slane %v2523_v4, %v2386_v42  ;;  %v201_v6 = vmul.f32 %v2523_v4, %v2523_v4 }
 0x146   :  { %v234_v11 = vcombine.high %v233_v5, %v233_v5  ;;  %v209_v12 = vrot.slane %v201_v6, %v2386_v42 }
 0x148   :  { %301 = vmatprep.mubr.f32.mxu1 %v234_v11  ;;  %v210_v15 = vcombine.high %v209_v12, %v209_v12  ;;  %v214_v16 = vsel %vm213_vm0, %v209_v12, 0.0 }
 0x149   :  { %302 = vmatmul.mubr.f32.vlgmr.msra.gmra.mrb[0].mxu1 %v233_v5 }
 0x14a   :  { %v215_v21 = vsel %vm213_vm0, %v210_v15, 0.0  ;;  %1745 = vmatpush1.bf16.msra.mxu1 %v2348_v7 }
 0x14b   :  { %v216_v22 = vadd.f32 %v215_v21, %v214_v16  ;;  %1747 = vmatprep.subr.bf16.mxu1 %v2350_v8 }
 0x14d   :  { %217 = vadd.xlane.f32.xlu0 %v216_v22 }
 0x14e   :  { %1749 = vmatpush1.bf16.msra.mxu1 %v2355_v13 }
 0x14f   :  { %1751 = vmatprep.subr.bf16.mxu1 %v2359_v14 }
 0x152   :  { %1753 = vmatpush1.bf16.msra.mxu1 %v2363_v19 }
 0x153   :  { %1755 = vmatprep.subr.bf16.mxu1 %v2367_v20 }
 0x156   :  { %1757 = vmatpush1.bf16.msra.mxu1 %v2371_v28 }
 0x157   :  { %1759 = vmatprep.subr.bf16.mxu1 %v2375_v29 }
 0x15a   :  { %1761 = vmatpush1.bf16.msra.mxu1 %v2379_v36 }
 0x15b   :  { %1763 = vmatprep.subr.bf16.mxu1 %v2383_v37 }
 0x15e   :  { %1765 = vmatpush1.bf16.msra.mxu1 %v2389_v43 }
 0x15f   :  { %1767 = vmatprep.subr.bf16.mxu1 %v2393_v44 }
 0x162   :  { %1769 = vmatpush1.bf16.msra.mxu1 %v2403_v51 }
 0x163   :  { %1771 = vmatprep.subr.bf16.mxu1 %v2409_v53 }
 0x166   :  { %1773 = vmatpush1.bf16.msra.mxu1 %v2413_v58 }
 0x167   :  { %1775 = vmatprep.subr.bf16.mxu1 %v2417_v59 }
 0x16a   :  { %1777 = vmatpush1.bf16.msra.mxu1 %v2421_v0 }
 0x16b   :  { %1779 = vmatprep.subr.bf16.mxu1 %v2425_v1 }
 0x16e   :  { %1781 = vmatpush1.bf16.msra.mxu1 %v2429_v9 }
 0x16f   :  { %1783 = vmatprep.subr.bf16.mxu1 %v2433_v10 }
 0x172   :  { %1785 = vmatpush1.bf16.msra.mxu1 %v2437_v17 }
 0x173   :  { %1787 = vmatprep.subr.bf16.mxu1 %v2441_v18 }
 0x176   :  { %1789 = vmatpush1.bf16.msra.mxu1 %v2445_v25 }
 0x177   :  { %1791 = vmatprep.subr.bf16.mxu1 %v2449_v26 }
 0x17a   :  { %1793 = vmatpush1.bf16.msra.mxu1 %v2453_v33 }
 0x17b   :  { %1795 = vmatprep.subr.bf16.mxu1 %v2457_v34 }
 0x17e   :  { %1797 = vmatpush1.bf16.msra.mxu1 %v2461_v41 }
 0x17f   :  { %1799 = vmatprep.subr.bf16.mxu1 %v2465_v45 }
 0x182   :  { %1801 = vmatpush1.bf16.msra.mxu1 %v2469_v54 }
 0x183   :  { %1803 = vmatprep.subr.bf16.mxu1 %v2473_v55 }
 0x186   :  { %1805 = vmatpush1.bf16.msra.mxu1 %v2477_v60 }
 0x187   :  { %1871 = vmatprep.subr.bf16.mxu1 %v2346_v3 }
 0x1da   :  { %v218_v23 = vpop.xlane.xlu0 %217 }
 0x1db   :  { %v219_v24 = vrot.slane %v218_v23, 4 }
 0x1dd   :  { %v220_v27 = vadd.f32 %v219_v24, %v218_v23 }
 0x1df   :  { %v221_v30 = vrot.slane %v220_v27, 2 }
 0x1e1   :  { %v222_v31 = vadd.f32 %v221_v30, %v220_v27 }
 0x1e3   :  { %v223_v32 = vrot.slane %v222_v31, 1 }
 0x1e5   :  { %v224_v35 = vadd.f32 %v223_v32, %v222_v31 }
 0x1e7   :  { %2126 = vpush %v224_v35 }
 0x218   :  { %s2127_s2 = spop %2126 }
 0x21c   :  { %v303_v38 = vpop.f32.mrb[0].mxu1 }
 0x21d   :  { %v305_v39 = vpop.f32.mrb[1].mxu1 }
 0x21e   :  { %v310_v40 = vcombine.low %v303_v38, %v305_v39 }
 0x220   :  { %v317_v46 = vrot.slane %v310_v40, %v2386_v42 }
 0x222   :  { %v319_v48 = vmul.f32 %v317_v46, %v2523_v4 }
 0x224   :  { %v327_v49 = vrot.slane %v319_v48, %v2386_v42 }
 0x226   :  { %v328_v52 = vcombine.high %v327_v49, %v327_v49  ;;  %v331_v56 = vsel %vm213_vm0, %v327_v49, 0.0 }
 0x228   :  { %v332_v57 = vsel %vm213_vm0, %v328_v52, 0.0 }
 0x229   :  { %v333_v50 = vadd.f32 %v332_v57, %v331_v56 }
 0x22b   :  { %334 = vadd.xlane.f32.xlu0 %v333_v50 }
 0x2b8   :  { %v335_v61 = vpop.xlane.xlu0 %334 }
 0x2b9   :  { %v336_v62 = vrot.slane %v335_v61, 4 }
 0x2bb   :  { %v337_v63 = vadd.f32 %v336_v62, %v335_v61 }
 0x2bd   :  { %v338_v2 = vrot.slane %v337_v63, 2 }
 0x2bf   :  { %v339_v5 = vadd.f32 %v338_v2, %v337_v63 }
 0x2c1   :  { %v340_v6 = vrot.slane %v339_v5, 1 }
 0x2c3   :  { %v341_v11 = vadd.f32 %v340_v6, %v339_v5 }
 0x2c5   :  { %2128 = vpush %v341_v11 }
 0x2f6   :  { %s2129_s11 = spop %2128 }
 0x2f7   :  { %v343_v12 = vstv %s2129_s11 }
 0x2f8   :  { %2194 = vrcp.f32 %v343_v12 }
 0x302   :  { %v2195_v15 = vpop.eup %2194 }
 0x303   :  { %2130 = vpush %v2195_v15 }
 0x334   :  { %s2131_s12 = spop %2130 }
 0x335   :  { %s346_s13 = smul.f32 %s2131_s12, %s2127_s2 }
 0x337   :  { %v2569_v16 = vstv %s346_s13 }
 0x338   :  { %v350_v21 = vmul.f32 %v2569_v16, %v303_v38  ;;  %v351_v22 = vmul.f32 %v2569_v16, %v305_v39  ;;  %v388_v38 = vstv %s2127_s2 }
 0x339   :  { %2196 = vrcp.f32 %v388_v38 }
 0x33a   :  { %v354_v23 = vcombine.low %v350_v21, %v351_v22 }
 0x33c   :  { %v361_v24 = vrot.slane %v354_v23, %v2386_v42 }
 0x33e   :  { %v2575_v27 = vsub.f32 %v2523_v4, %v361_v24 }
 0x340   :  { %v364_v30 = vmul.f32 %v2575_v27, %v2575_v27 }
 0x342   :  { %v372_v31 = vrot.slane %v364_v30, %v2386_v42 }
 0x343   :  { %v2197_v61 = vpop.eup %2196 }
 0x344   :  { %v373_v32 = vcombine.high %v372_v31, %v372_v31  ;;  %v376_v35 = vsel %vm213_vm0, %v372_v31, 0.0 }
 0x346   :  { %v377_v40 = vsel %vm213_vm0, %v373_v32, 0.0 }
 0x347   :  { %v378_v46 = vadd.f32 %v377_v40, %v376_v35 }
 0x349   :  { %379 = vadd.xlane.f32.xlu1 %v378_v46 }
 0x3d6   :  { %v380_v39 = vpop.xlane.xlu1 %379 }
 0x3d7   :  { %v381_v48 = vrot.slane %v380_v39, 4 }
 0x3d9   :  { %v382_v49 = vadd.f32 %v381_v48, %v380_v39 }
 0x3db   :  { %v383_v52 = vrot.slane %v382_v49, 2 }
 0x3dd   :  { %v384_v56 = vadd.f32 %v383_v52, %v382_v49 }
 0x3df   :  { %v385_v57 = vrot.slane %v384_v56, 1 }
 0x3e1   :  { %v386_v50 = vadd.f32 %v385_v57, %v384_v56  ;;  %v348_v57 = vmul.f32 %v2569_v16, %v2523_v4 }
 0x3e3   :  { %2132 = vpush %v386_v50 }
 0x3e4   :  { %2134 = vpush %v2197_v61  ;;  %v349_v61 = vadd.f32 %v348_v57, %v2395_v47 }
 0x414   :  { %s2582_s14 = spop %2132 }
 0x415   :  { %s2135_s15 = spop %2134 }
 0x416   :  { %s391_s16 = smul.f32 %s2135_s15, %s2582_s14 }
 0x418   :  { %v392_v62 = vstv %s391_s16 }
 0x419   :  { %v393_v63 = vmul.f32 %v392_v62, %v2523_v4 }
 0x41b   :  { %v2587_v2 = vadd.f32 %v393_v63, %v2575_v27 }
 0x41d   :  { %v402_v5 = vrot.slane %v2587_v2, %v2386_v42 }
 0x41f   :  { %v403_v6 = vcombine.high %v402_v5, %v402_v5 }
 0x421   :  { %470 = vmatprep.mubr.f32.mxu0 %v403_v6 }
 0x422   :  { %471 = vmatmul.mubr.f32.vlgmr.msra.gmra.mrb[2].mxu0 %v402_v5 }
 0x423   :  { %1809 = vmatpush1.bf16.msra.mxu0 %v2348_v7 }
 0x424   :  { %1811 = vmatprep.subr.bf16.mxu0 %v2350_v8 }
 0x427   :  { %1813 = vmatpush1.bf16.msra.mxu0 %v2355_v13 }
 0x428   :  { %1815 = vmatprep.subr.bf16.mxu0 %v2359_v14 }
 0x42b   :  { %1817 = vmatpush1.bf16.msra.mxu0 %v2363_v19 }
 0x42c   :  { %1819 = vmatprep.subr.bf16.mxu0 %v2367_v20 }
 0x42f   :  { %1821 = vmatpush1.bf16.msra.mxu0 %v2371_v28 }
 0x430   :  { %1823 = vmatprep.subr.bf16.mxu0 %v2375_v29 }
 0x433   :  { %1825 = vmatpush1.bf16.msra.mxu0 %v2379_v36 }
 0x434   :  { %1827 = vmatprep.subr.bf16.mxu0 %v2383_v37 }
 0x437   :  { %1829 = vmatpush1.bf16.msra.mxu0 %v2389_v43 }
 0x438   :  { %1831 = vmatprep.subr.bf16.mxu0 %v2393_v44 }
 0x43b   :  { %1833 = vmatpush1.bf16.msra.mxu0 %v2403_v51 }
 0x43c   :  { %1835 = vmatprep.subr.bf16.mxu0 %v2409_v53 }
 0x43f   :  { %1837 = vmatpush1.bf16.msra.mxu0 %v2413_v58 }
 0x440   :  { %1839 = vmatprep.subr.bf16.mxu0 %v2417_v59 }
 0x443   :  { %1841 = vmatpush1.bf16.msra.mxu0 %v2421_v0 }
 0x444   :  { %1843 = vmatprep.subr.bf16.mxu0 %v2425_v1 }
 0x447   :  { %1845 = vmatpush1.bf16.msra.mxu0 %v2429_v9 }
 0x448   :  { %1847 = vmatprep.subr.bf16.mxu0 %v2433_v10 }
 0x44b   :  { %1849 = vmatpush1.bf16.msra.mxu0 %v2437_v17 }
 0x44c   :  { %1851 = vmatprep.subr.bf16.mxu0 %v2441_v18 }
 0x44f   :  { %1853 = vmatpush1.bf16.msra.mxu0 %v2445_v25 }
 0x450   :  { %1855 = vmatprep.subr.bf16.mxu0 %v2449_v26 }
 0x453   :  { %1857 = vmatpush1.bf16.msra.mxu0 %v2453_v33 }
 0x454   :  { %1859 = vmatprep.subr.bf16.mxu0 %v2457_v34 }
 0x457   :  { %1861 = vmatpush1.bf16.msra.mxu0 %v2461_v41 }
 0x458   :  { %1863 = vmatprep.subr.bf16.mxu0 %v2465_v45 }
 0x45b   :  { %1865 = vmatpush1.bf16.msra.mxu0 %v2469_v54 }
 0x45c   :  { %1867 = vmatprep.subr.bf16.mxu0 %v2473_v55 }
 0x45f   :  { %1869 = vmatpush1.bf16.msra.mxu0 %v2477_v60 }
 0x460   :  { %1935 = vmatprep.subr.bf16.mxu0 %v2346_v3 }
 0x4f5   :  { %v472_v11 = vpop.f32.mrb[2].mxu0 }
 0x4f6   :  { %v474_v12 = vpop.f32.mrb[3].mxu0 }
 0x4f7   :  { %v479_v15 = vcombine.low %v472_v11, %v474_v12 }
 0x4f9   :  { %v486_v21 = vrot.slane %v479_v15, %v2386_v42 }
 0x4fb   :  { %v488_v22 = vmul.f32 %v486_v21, %v2587_v2 }
 0x4fd   :  { %v496_v23 = vrot.slane %v488_v22, %v2386_v42 }
 0x4ff   :  { %v497_v24 = vcombine.high %v496_v23, %v496_v23  ;;  %v500_v30 = vsel %vm213_vm0, %v496_v23, 0.0 }
 0x501   :  { %v501_v31 = vsel %vm213_vm0, %v497_v24, 0.0 }
 0x502   :  { %v502_v32 = vadd.f32 %v501_v31, %v500_v30 }
 0x504   :  { %503 = vadd.xlane.f32.xlu1 %v502_v32 }
 0x591   :  { %v504_v35 = vpop.xlane.xlu1 %503 }
 0x592   :  { %v505_v40 = vrot.slane %v504_v35, 4 }
 0x594   :  { %v506_v46 = vadd.f32 %v505_v40, %v504_v35 }
 0x596   :  { %v507_v38 = vrot.slane %v506_v46, 2 }
 0x598   :  { %v508_v39 = vadd.f32 %v507_v38, %v506_v46 }
 0x59a   :  { %v509_v48 = vrot.slane %v508_v39, 1 }
 0x59c   :  { %v510_v49 = vadd.f32 %v509_v48, %v508_v39 }
 0x59e   :  { %2136 = vpush %v510_v49 }
 0x5cf   :  { %s2137_s17 = spop %2136 }
 0x5d0   :  { %v512_v52 = vstv %s2137_s17 }
 0x5d1   :  { %2198 = vrcp.f32 %v512_v52 }
 0x5db   :  { %v2199_v56 = vpop.eup %2198 }
 0x5dc   :  { %2138 = vpush %v2199_v56 }
 0x60d   :  { %s2139_s18 = spop %2138 }
 0x60e   :  { %s515_s19 = smul.f32 %s2139_s18, %s2582_s14 }
 0x610   :  { %v516_v50 = vstv %s515_s19 }
 0x611   :  { %v517_v62 = vmul.f32 %v516_v50, %v2587_v2  ;;  %v519_v63 = vmul.f32 %v516_v50, %v472_v11  ;;  %v520_v5 = vmul.f32 %v516_v50, %v474_v12  ;;  %v557_v12 = vstv %s2582_s14 }
 0x612   :  { %2200 = vrcp.f32 %v557_v12 }
 0x613   :  { %v2633_v6 = vadd.f32 %v517_v62, %v349_v61  ;;  %v523_v15 = vcombine.low %v519_v63, %v520_v5 }
 0x615   :  { %v530_v21 = vrot.slane %v523_v15, %v2386_v42 }
 0x617   :  { %v2637_v22 = vsub.f32 %v2575_v27, %v530_v21 }
 0x619   :  { %v533_v4 = vmul.f32 %v2637_v22, %v2637_v22 }
 0x61b   :  { %v541_v16 = vrot.slane %v533_v4, %v2386_v42 }
 0x61c   :  { %v2201_v38 = vpop.eup %2200 }
 0x61d   :  { %v542_v23 = vcombine.high %v541_v16, %v541_v16  ;;  %v545_v47 = vsel %vm213_vm0, %v541_v16, 0.0 }
 0x61f   :  { %v546_v24 = vsel %vm213_vm0, %v542_v23, 0.0 }
 0x620   :  { %v547_v11 = vadd.f32 %v546_v24, %v545_v47 }
 0x622   :  { %548 = vadd.xlane.f32.xlu0 %v547_v11 }
 0x6af   :  { %v549_v30 = vpop.xlane.xlu0 %548 }
 0x6b0   :  { %v550_v31 = vrot.slane %v549_v30, 4 }
 0x6b2   :  { %v551_v32 = vadd.f32 %v550_v31, %v549_v30 }
 0x6b4   :  { %v552_v35 = vrot.slane %v551_v32, 2 }
 0x6b6   :  { %v553_v27 = vadd.f32 %v552_v35, %v551_v32 }
 0x6b8   :  { %v554_v40 = vrot.slane %v553_v27, 1 }
 0x6ba   :  { %v555_v46 = vadd.f32 %v554_v40, %v553_v27 }
 0x6bc   :  { %2140 = vpush %v555_v46 }
 0x6bd   :  { %2142 = vpush %v2201_v38 }
 0x6ed   :  { %s2645_s20 = spop %2140 }
 0x6ee   :  { %s2143_s21 = spop %2142 }
 0x6ef   :  { %s560_s22 = smul.f32 %s2143_s21, %s2645_s20 }
 0x6f1   :  { %v561_v39 = vstv %s560_s22 }
 0x6f2   :  { %v562_v48 = vmul.f32 %v561_v39, %v2587_v2 }
 0x6f4   :  { %v2650_v49 = vadd.f32 %v562_v48, %v2637_v22 }
 0x6f6   :  { %v571_v52 = vrot.slane %v2650_v49, %v2386_v42 }
 0x6f8   :  { %v572_v56 = vcombine.high %v571_v52, %v571_v52 }
 0x6fa   :  { %639 = vmatprep.mubr.f32.mxu1 %v572_v56 }
 0x6fb   :  { %640 = vmatmul.mubr.f32.vlgmr.msra.gmra.mrb[2].mxu1 %v571_v52 }
 0x6fc   :  { %1873 = vmatpush1.bf16.msra.mxu1 %v2348_v7 }
 0x6fd   :  { %1875 = vmatprep.subr.bf16.mxu1 %v2350_v8 }
 0x700   :  { %1877 = vmatpush1.bf16.msra.mxu1 %v2355_v13 }
 0x701   :  { %1879 = vmatprep.subr.bf16.mxu1 %v2359_v14 }
 0x704   :  { %1881 = vmatpush1.bf16.msra.mxu1 %v2363_v19 }
 0x705   :  { %1883 = vmatprep.subr.bf16.mxu1 %v2367_v20 }
 0x708   :  { %1885 = vmatpush1.bf16.msra.mxu1 %v2371_v28 }
 0x709   :  { %1887 = vmatprep.subr.bf16.mxu1 %v2375_v29 }
 0x70c   :  { %1889 = vmatpush1.bf16.msra.mxu1 %v2379_v36 }
 0x70d   :  { %1891 = vmatprep.subr.bf16.mxu1 %v2383_v37 }
 0x710   :  { %1893 = vmatpush1.bf16.msra.mxu1 %v2389_v43 }
 0x711   :  { %1895 = vmatprep.subr.bf16.mxu1 %v2393_v44 }
 0x714   :  { %1897 = vmatpush1.bf16.msra.mxu1 %v2403_v51 }
 0x715   :  { %1899 = vmatprep.subr.bf16.mxu1 %v2409_v53 }
 0x718   :  { %1901 = vmatpush1.bf16.msra.mxu1 %v2413_v58 }
 0x719   :  { %1903 = vmatprep.subr.bf16.mxu1 %v2417_v59 }
 0x71c   :  { %1905 = vmatpush1.bf16.msra.mxu1 %v2421_v0 }
 0x71d   :  { %1907 = vmatprep.subr.bf16.mxu1 %v2425_v1 }
 0x720   :  { %1909 = vmatpush1.bf16.msra.mxu1 %v2429_v9 }
 0x721   :  { %1911 = vmatprep.subr.bf16.mxu1 %v2433_v10 }
 0x724   :  { %1913 = vmatpush1.bf16.msra.mxu1 %v2437_v17 }
 0x725   :  { %1915 = vmatprep.subr.bf16.mxu1 %v2441_v18 }
 0x728   :  { %1917 = vmatpush1.bf16.msra.mxu1 %v2445_v25 }
 0x729   :  { %1919 = vmatprep.subr.bf16.mxu1 %v2449_v26 }
 0x72c   :  { %1921 = vmatpush1.bf16.msra.mxu1 %v2453_v33 }
 0x72d   :  { %1923 = vmatprep.subr.bf16.mxu1 %v2457_v34 }
 0x730   :  { %1925 = vmatpush1.bf16.msra.mxu1 %v2461_v41 }
 0x731   :  { %1927 = vmatprep.subr.bf16.mxu1 %v2465_v45 }
 0x734   :  { %1929 = vmatpush1.bf16.msra.mxu1 %v2469_v54 }
 0x735   :  { %1931 = vmatprep.subr.bf16.mxu1 %v2473_v55 }
 0x738   :  { %1933 = vmatpush1.bf16.msra.mxu1 %v2477_v60 }
 0x739   :  { %1999 = vmatprep.subr.bf16.mxu1 %v2346_v3 }
 0x7ce   :  { %v641_v2 = vpop.f32.mrb[2].mxu1 }
 0x7cf   :  { %v643_v57 = vpop.f32.mrb[3].mxu1 }
 0x7d0   :  { %v648_v50 = vcombine.low %v641_v2, %v643_v57 }
 0x7d2   :  { %v655_v61 = vrot.slane %v648_v50, %v2386_v42 }
 0x7d4   :  { %v657_v62 = vmul.f32 %v655_v61, %v2650_v49 }
 0x7d6   :  { %v665_v63 = vrot.slane %v657_v62, %v2386_v42 }
 0x7d8   :  { %v666_v5 = vcombine.high %v665_v63, %v665_v63  ;;  %v669_v15 = vsel %vm213_vm0, %v665_v63, 0.0 }
 0x7da   :  { %v670_v21 = vsel %vm213_vm0, %v666_v5, 0.0 }
 0x7db   :  { %v671_v4 = vadd.f32 %v670_v21, %v669_v15 }
 0x7dd   :  { %672 = vadd.xlane.f32.xlu1 %v671_v4 }
 0x86a   :  { %v673_v16 = vpop.xlane.xlu1 %672 }
 0x86b   :  { %v674_v23 = vrot.slane %v673_v16, 4 }
 0x86d   :  { %v675_v47 = vadd.f32 %v674_v23, %v673_v16 }
 0x86f   :  { %v676_v24 = vrot.slane %v675_v47, 2 }
 0x871   :  { %v677_v11 = vadd.f32 %v676_v24, %v675_v47 }
 0x873   :  { %v678_v12 = vrot.slane %v677_v11, 1 }
 0x875   :  { %v679_v30 = vadd.f32 %v678_v12, %v677_v11 }
 0x877   :  { %2144 = vpush %v679_v30 }
 0x8a8   :  { %s2145_s23 = spop %2144 }
 0x8a9   :  { %v681_v31 = vstv %s2145_s23 }
 0x8aa   :  { %2202 = vrcp.f32 %v681_v31 }
 0x8b4   :  { %v2203_v32 = vpop.eup %2202 }
 0x8b5   :  { %2146 = vpush %v2203_v32 }
 0x8e6   :  { %s2147_s24 = spop %2146 }
 0x8e7   :  { %s684_s25 = smul.f32 %s2147_s24, %s2645_s20 }
 0x8e9   :  { %v685_v35 = vstv %s684_s25 }
 0x8ea   :  { %v686_v27 = vmul.f32 %v685_v35, %v2650_v49  ;;  %v688_v40 = vmul.f32 %v685_v35, %v641_v2  ;;  %v689_v46 = vmul.f32 %v685_v35, %v643_v57 }
 0x8ec   :  { %v2694_v38 = vadd.f32 %v686_v27, %v2633_v6  ;;  %v692_v39 = vcombine.low %v688_v40, %v689_v46  ;;  %v726_v6 = vstv %s2645_s20 }
 0x8ed   :  { %2204 = vrcp.f32 %v726_v6 }
 0x8ee   :  { %v699_v48 = vrot.slane %v692_v39, %v2386_v42 }
 0x8f0   :  { %v2698_v52 = vsub.f32 %v2637_v22, %v699_v48 }
 0x8f2   :  { %v702_v56 = vmul.f32 %v2698_v52, %v2698_v52 }
 0x8f4   :  { %v710_v50 = vrot.slane %v702_v56, %v2386_v42 }
 0x8f6   :  { %v711_v61 = vcombine.high %v710_v50, %v710_v50  ;;  %v714_v62 = vsel %vm213_vm0, %v710_v50, 0.0 }
 0x8f7   :  { %v2205_v23 = vpop.eup %2204 }
 0x8f8   :  { %v715_v2 = vsel %vm213_vm0, %v711_v61, 0.0 }
 0x8f9   :  { %v716_v57 = vadd.f32 %v715_v2, %v714_v62 }
 0x8fb   :  { %717 = vadd.xlane.f32.xlu0 %v716_v57 }
 0x988   :  { %v718_v63 = vpop.xlane.xlu0 %717 }
 0x989   :  { %v719_v5 = vrot.slane %v718_v63, 4 }
 0x98b   :  { %v720_v15 = vadd.f32 %v719_v5, %v718_v63 }
 0x98d   :  { %v721_v21 = vrot.slane %v720_v15, 2 }
 0x98f   :  { %v722_v22 = vadd.f32 %v721_v21, %v720_v15 }
 0x991   :  { %v723_v4 = vrot.slane %v722_v22, 1 }
 0x993   :  { %v724_v16 = vadd.f32 %v723_v4, %v722_v22 }
 0x995   :  { %2148 = vpush %v724_v16 }
 0x996   :  { %2150 = vpush %v2205_v23 }
 0x9c6   :  { %s2706_s26 = spop %2148 }
 0x9c7   :  { %s2151_s27 = spop %2150 }
 0x9c8   :  { %s729_s28 = smul.f32 %s2151_s27, %s2706_s26 }
 0x9ca   :  { %v730_v47 = vstv %s729_s28 }
 0x9cb   :  { %v731_v24 = vmul.f32 %v730_v47, %v2650_v49 }
 0x9cd   :  { %v2711_v11 = vadd.f32 %v731_v24, %v2698_v52 }
 0x9cf   :  { %v740_v12 = vrot.slane %v2711_v11, %v2386_v42 }
 0x9d1   :  { %v741_v30 = vcombine.high %v740_v12, %v740_v12 }
 0x9d3   :  { %808 = vmatprep.mubr.f32.mxu0 %v741_v30 }
 0x9d4   :  { %809 = vmatmul.mubr.f32.vlgmr.msra.gmra.mrb[4].mxu0 %v740_v12 }
 0x9d5   :  { %1937 = vmatpush1.bf16.msra.mxu0 %v2348_v7 }
 0x9d6   :  { %1939 = vmatprep.subr.bf16.mxu0 %v2350_v8 }
 0x9d9   :  { %1941 = vmatpush1.bf16.msra.mxu0 %v2355_v13 }
 0x9da   :  { %1943 = vmatprep.subr.bf16.mxu0 %v2359_v14 }
 0x9dd   :  { %1945 = vmatpush1.bf16.msra.mxu0 %v2363_v19 }
 0x9de   :  { %1947 = vmatprep.subr.bf16.mxu0 %v2367_v20 }
 0x9e1   :  { %1949 = vmatpush1.bf16.msra.mxu0 %v2371_v28 }
 0x9e2   :  { %1951 = vmatprep.subr.bf16.mxu0 %v2375_v29 }
 0x9e5   :  { %1953 = vmatpush1.bf16.msra.mxu0 %v2379_v36 }
 0x9e6   :  { %1955 = vmatprep.subr.bf16.mxu0 %v2383_v37 }
 0x9e9   :  { %1957 = vmatpush1.bf16.msra.mxu0 %v2389_v43 }
 0x9ea   :  { %1959 = vmatprep.subr.bf16.mxu0 %v2393_v44 }
 0x9ed   :  { %1961 = vmatpush1.bf16.msra.mxu0 %v2403_v51 }
 0x9ee   :  { %1963 = vmatprep.subr.bf16.mxu0 %v2409_v53 }
 0x9f1   :  { %1965 = vmatpush1.bf16.msra.mxu0 %v2413_v58 }
 0x9f2   :  { %1967 = vmatprep.subr.bf16.mxu0 %v2417_v59 }
 0x9f5   :  { %1969 = vmatpush1.bf16.msra.mxu0 %v2421_v0 }
 0x9f6   :  { %1971 = vmatprep.subr.bf16.mxu0 %v2425_v1 }
 0x9f9   :  { %1973 = vmatpush1.bf16.msra.mxu0 %v2429_v9 }
 0x9fa   :  { %1975 = vmatprep.subr.bf16.mxu0 %v2433_v10 }
 0x9fd   :  { %1977 = vmatpush1.bf16.msra.mxu0 %v2437_v17 }
 0x9fe   :  { %1979 = vmatprep.subr.bf16.mxu0 %v2441_v18 }
 0xa01   :  { %1981 = vmatpush1.bf16.msra.mxu0 %v2445_v25 }
 0xa02   :  { %1983 = vmatprep.subr.bf16.mxu0 %v2449_v26 }
 0xa05   :  { %1985 = vmatpush1.bf16.msra.mxu0 %v2453_v33 }
 0xa06   :  { %1987 = vmatprep.subr.bf16.mxu0 %v2457_v34 }
 0xa09   :  { %1989 = vmatpush1.bf16.msra.mxu0 %v2461_v41 }
 0xa0a   :  { %1991 = vmatprep.subr.bf16.mxu0 %v2465_v45 }
 0xa0d   :  { %1993 = vmatpush1.bf16.msra.mxu0 %v2469_v54 }
 0xa0e   :  { %1995 = vmatprep.subr.bf16.mxu0 %v2473_v55 }
 0xa11   :  { %1997 = vmatpush1.bf16.msra.mxu0 %v2477_v60 }
 0xa12   :  { %2063 = vmatprep.subr.bf16.mxu0 %v2346_v3 }
 0xaa7   :  { %v810_v49 = vpop.f32.mrb[4].mxu0 }
 0xaa8   :  { %v812_v31 = vpop.f32.mrb[5].mxu0 }
 0xaa9   :  { %v817_v32 = vcombine.low %v810_v49, %v812_v31 }
 0xaab   :  { %v824_v35 = vrot.slane %v817_v32, %v2386_v42 }
 0xaad   :  { %v826_v27 = vmul.f32 %v824_v35, %v2711_v11 }
 0xaaf   :  { %v834_v40 = vrot.slane %v826_v27, %v2386_v42 }
 0xab1   :  { %v835_v46 = vcombine.high %v834_v40, %v834_v40  ;;  %v838_v39 = vsel %vm213_vm0, %v834_v40, 0.0 }
 0xab3   :  { %v839_v48 = vsel %vm213_vm0, %v835_v46, 0.0 }
 0xab4   :  { %v840_v56 = vadd.f32 %v839_v48, %v838_v39 }
 0xab6   :  { %841 = vadd.xlane.f32.xlu1 %v840_v56 }
 0xb43   :  { %v842_v50 = vpop.xlane.xlu1 %841 }
 0xb44   :  { %v843_v61 = vrot.slane %v842_v50, 4 }
 0xb46   :  { %v844_v3 = vadd.f32 %v843_v61, %v842_v50 }
 0xb48   :  { %v845_v62 = vrot.slane %v844_v3, 2 }
 0xb4a   :  { %v846_v2 = vadd.f32 %v845_v62, %v844_v3 }
 0xb4c   :  { %v847_v57 = vrot.slane %v846_v2, 1 }
 0xb4e   :  { %v848_v6 = vadd.f32 %v847_v57, %v846_v2 }
 0xb50   :  { %2152 = vpush %v848_v6 }
 0xb81   :  { %s2153_s29 = spop %2152 }
 0xb82   :  { %v850_v63 = vstv %s2153_s29 }
 0xb83   :  { %2206 = vrcp.f32 %v850_v63 }
 0xb8d   :  { %v2207_v5 = vpop.eup %2206 }
 0xb8e   :  { %2154 = vpush %v2207_v5 }
 0xbbf   :  { %s2155_s30 = spop %2154 }
 0xbc0   :  { %s853_s4 = smul.f32 %s2155_s30, %s2706_s26 }
 0xbc2   :  { %v854_v15 = vstv %s853_s4 }
 0xbc3   :  { %v855_v21 = vmul.f32 %v854_v15, %v2711_v11  ;;  %v857_v22 = vmul.f32 %v854_v15, %v810_v49  ;;  %v858_v4 = vmul.f32 %v854_v15, %v812_v31 }
 0xbc5   :  { %v2755_v16 = vadd.f32 %v855_v21, %v2694_v38  ;;  %v861_v23 = vcombine.low %v857_v22, %v858_v4  ;;  %v895_v38 = vstv %s2706_s26  ;;  %s2301_s26 = smov [#allocation7]  }
 0xbc6   :  { %2208 = vrcp.f32 %v895_v38  ;;  %s1540_s27 = sshll.u32 %s2301_s26, 4  ;;  %s1541_s27 = int_to_ptr.vmem [resolvable:$true] %s1540_s27 }
 0xbc7   :  { %v868_v47 = vrot.slane %v861_v23, %v2386_v42  ;;  %s2268_s28 = scalar_lea.vmem %s1541_s27, 64  ;;  %p2273_p3 = scmp.lt.s32.totalorder %s1541_s27, %s1541_s27 }
 0xbc8   :  { %p2269_p2 = scmp.ne.s32.totalorder %s1541_s27, %s2268_s28  ;;  %p2274_p4 = scmp.lt.s32.totalorder %s2268_s28, %s2268_s28 }
 0xbc9   :  { %v2759_v24 = vsub.f32 %v2698_v52, %v868_v47 }
 0xbca   :  { %p2275_p5 = por %p2274_p4, %p2273_p3 }
 0xbcb   :  { %v871_v12 = vmul.f32 %v2759_v24, %v2759_v24 }
 0xbcc   :  { %p2276_p6 = pnand %p2275_p5, %p2269_p2 }
 0xbcd   :  { %v879_v30 = vrot.slane %v871_v12, %v2386_v42 }
 0xbcf   :  { %v880_v32 = vcombine.high %v879_v30, %v879_v30  ;;  %v883_v35 = vsel %vm213_vm0, %v879_v30, 0.0 }
 0xbd0   :  { %v2209_v50 = vpop.eup %2208 }
 0xbd1   :  { %v884_v49 = vsel %vm213_vm0, %v880_v32, 0.0 }
 0xbd2   :  { %v885_v31 = vadd.f32 %v884_v49, %v883_v35 }
 0xbd4   :  { %886 = vadd.xlane.f32.xlu0 %v885_v31 }
 0xc61   :  { %v887_v27 = vpop.xlane.xlu0 %886 }
 0xc62   :  { %v888_v40 = vrot.slane %v887_v27, 4 }
 0xc64   :  { %v889_v46 = vadd.f32 %v888_v40, %v887_v27 }
 0xc66   :  { %v890_v39 = vrot.slane %v889_v46, 2 }
 0xc68   :  { %v891_v52 = vadd.f32 %v890_v39, %v889_v46 }
 0xc6a   :  { %v892_v48 = vrot.slane %v891_v52, 1 }
 0xc6c   :  { %v893_v56 = vadd.f32 %v892_v48, %v891_v52 }
 0xc6e   :  { %2156 = vpush %v893_v56 }
 0xc6f   :  { %2158 = vpush %v2209_v50 }
 0xc9f   :  { %s2767_s5 = spop %2156 }
 0xca0   :  { %s2159_s6 = spop %2158 }
 0xca1   :  { %s898_s7 = smul.f32 %s2159_s6, %s2767_s5 }
 0xca3   :  { %v899_v61 = vstv %s898_s7 }
 0xca4   :  { %v900_v3 = vmul.f32 %v899_v61, %v2711_v11 }
 0xca6   :  { %v2772_v62 = vadd.f32 %v900_v3, %v2759_v24 }
 0xca8   :  { %v909_v2 = vrot.slane %v2772_v62, %v2386_v42 }
 0xcaa   :  { %v910_v57 = vcombine.high %v909_v2, %v909_v2 }
 0xcac   :  { %977 = vmatprep.mubr.f32.mxu1 %v910_v57 }
 0xcad   :  { %978 = vmatmul.mubr.f32.vlgmr.msra.gmra.mrb[4].mxu1 %v909_v2 }
 0xcae   :  { %2001 = vmatpush1.bf16.msra.mxu1 %v2348_v7 }
 0xcaf   :  { %2003 = vmatprep.subr.bf16.mxu1 %v2350_v8 }
 0xcb2   :  { %2005 = vmatpush1.bf16.msra.mxu1 %v2355_v13 }
 0xcb3   :  { %2007 = vmatprep.subr.bf16.mxu1 %v2359_v14 }
 0xcb6   :  { %2009 = vmatpush1.bf16.msra.mxu1 %v2363_v19 }
 0xcb7   :  { %2011 = vmatprep.subr.bf16.mxu1 %v2367_v20 }
 0xcba   :  { %2013 = vmatpush1.bf16.msra.mxu1 %v2371_v28 }
 0xcbb   :  { %2015 = vmatprep.subr.bf16.mxu1 %v2375_v29 }
 0xcbe   :  { %2017 = vmatpush1.bf16.msra.mxu1 %v2379_v36 }
 0xcbf   :  { %2019 = vmatprep.subr.bf16.mxu1 %v2383_v37 }
 0xcc2   :  { %2021 = vmatpush1.bf16.msra.mxu1 %v2389_v43 }
 0xcc3   :  { %2023 = vmatprep.subr.bf16.mxu1 %v2393_v44 }
 0xcc6   :  { %2025 = vmatpush1.bf16.msra.mxu1 %v2403_v51 }
 0xcc7   :  { %2027 = vmatprep.subr.bf16.mxu1 %v2409_v53 }
 0xcca   :  { %2029 = vmatpush1.bf16.msra.mxu1 %v2413_v58 }
 0xccb   :  { %2031 = vmatprep.subr.bf16.mxu1 %v2417_v59 }
 0xcce   :  { %2033 = vmatpush1.bf16.msra.mxu1 %v2421_v0 }
 0xccf   :  { %2035 = vmatprep.subr.bf16.mxu1 %v2425_v1 }
 0xcd2   :  { %2037 = vmatpush1.bf16.msra.mxu1 %v2429_v9 }
 0xcd3   :  { %2039 = vmatprep.subr.bf16.mxu1 %v2433_v10 }
 0xcd6   :  { %2041 = vmatpush1.bf16.msra.mxu1 %v2437_v17 }
 0xcd7   :  { %2043 = vmatprep.subr.bf16.mxu1 %v2441_v18 }
 0xcda   :  { %2045 = vmatpush1.bf16.msra.mxu1 %v2445_v25 }
 0xcdb   :  { %2047 = vmatprep.subr.bf16.mxu1 %v2449_v26 }
 0xcde   :  { %2049 = vmatpush1.bf16.msra.mxu1 %v2453_v33 }
 0xcdf   :  { %2051 = vmatprep.subr.bf16.mxu1 %v2457_v34 }
 0xce2   :  { %2053 = vmatpush1.bf16.msra.mxu1 %v2461_v41 }
 0xce3   :  { %2055 = vmatprep.subr.bf16.mxu1 %v2465_v45 }
 0xce6   :  { %2057 = vmatpush1.bf16.msra.mxu1 %v2469_v54 }
 0xce7   :  { %2059 = vmatprep.subr.bf16.mxu1 %v2473_v55 }
 0xcea   :  { %2061 = vmatpush1.bf16.msra.mxu1 %v2477_v60 }
 0xd80   :  { %v979_v11 = vpop.f32.mrb[4].mxu1 }
 0xd81   :  { %v981_v6 = vpop.f32.mrb[5].mxu1 }
 0xd82   :  { %v986_v63 = vcombine.low %v979_v11, %v981_v6 }
 0xd84   :  { %v993_v5 = vrot.slane %v986_v63, %v2386_v42 }
 0xd86   :  { %v995_v15 = vmul.f32 %v993_v5, %v2772_v62 }
 0xd88   :  { %v1003_v21 = vrot.slane %v995_v15, %v2386_v42 }
 0xd8a   :  { %v1004_v22 = vcombine.high %v1003_v21, %v1003_v21  ;;  %v1007_v4 = vsel %vm213_vm0, %v1003_v21, 0.0 }
 0xd8c   :  { %v1008_v23 = vsel %vm213_vm0, %v1004_v22, 0.0 }
 0xd8d   :  { %v1009_v47 = vadd.f32 %v1008_v23, %v1007_v4 }
 0xd8f   :  { %1010 = vadd.xlane.f32.xlu1 %v1009_v47 }
 0xe1c   :  { %v1011_v12 = vpop.xlane.xlu1 %1010 }
 0xe1d   :  { %v1012_v30 = vrot.slane %v1011_v12, 4 }
 0xe1f   :  { %v1013_v32 = vadd.f32 %v1012_v30, %v1011_v12 }
 0xe21   :  { %v1014_v35 = vrot.slane %v1013_v32, 2 }
 0xe23   :  { %v1015_v49 = vadd.f32 %v1014_v35, %v1013_v32 }
 0xe25   :  { %v1016_v31 = vrot.slane %v1015_v49, 1 }
 0xe27   :  { %v1017_v38 = vadd.f32 %v1016_v31, %v1015_v49 }
 0xe29   :  { %2160 = vpush %v1017_v38 }
 0xe5a   :  { %s2161_s8 = spop %2160 }
 0xe5b   :  { %v1019_v27 = vstv %s2161_s8 }
 0xe5c   :  { %2210 = vrcp.f32 %v1019_v27 }
 0xe66   :  { %v2211_v40 = vpop.eup %2210 }
 0xe67   :  { %2162 = vpush %v2211_v40 }
 0xe98   :  { %s2163_s0 = spop %2162 }
 0xe99   :  { %s1022_s9 = smul.f32 %s2163_s0, %s2767_s5 }
 0xe9b   :  { %v1023_v46 = vstv %s1022_s9 }
 0xe9c   :  { %v1024_v39 = vmul.f32 %v1023_v46, %v2772_v62  ;;  %v1026_v52 = vmul.f32 %v1023_v46, %v979_v11  ;;  %v1027_v48 = vmul.f32 %v1023_v46, %v981_v6 }
 0xe9e   :  { %v2815_v56 = vadd.f32 %v1024_v39, %v2755_v16  ;;  %v1030_v50 = vcombine.low %v1026_v52, %v1027_v48  ;;  %v1064_v16 = vstv %s2767_s5 }
 0xe9f   :  { %2212 = vrcp.f32 %v1064_v16 }
 0xea0   :  { %v1037_v61 = vrot.slane %v1030_v50, %v2386_v42 }
 0xea2   :  { %v2819_v3 = vsub.f32 %v2759_v24, %v1037_v61 }
 0xea4   :  { %v1040_v2 = vmul.f32 %v2819_v3, %v2819_v3 }
 0xea6   :  { %v1048_v57 = vrot.slane %v1040_v2, %v2386_v42 }
 0xea8   :  { %v1049_v63 = vcombine.high %v1048_v57, %v1048_v57  ;;  %v1052_v5 = vsel %vm213_vm0, %v1048_v57, 0.0 }
 0xea9   :  { %v2213_v12 = vpop.eup %2212 }
 0xeaa   :  { %v1053_v11 = vsel %vm213_vm0, %v1049_v63, 0.0 }
 0xeab   :  { %v1054_v6 = vadd.f32 %v1053_v11, %v1052_v5 }
 0xead   :  { %1055 = vadd.xlane.f32.xlu0 %v1054_v6 }
 0xf3a   :  { %v1056_v15 = vpop.xlane.xlu0 %1055 }
 0xf3b   :  { %v1057_v21 = vrot.slane %v1056_v15, 4 }
 0xf3d   :  { %v1058_v22 = vadd.f32 %v1057_v21, %v1056_v15 }
 0xf3f   :  { %v1059_v4 = vrot.slane %v1058_v22, 2 }
 0xf41   :  { %v1060_v24 = vadd.f32 %v1059_v4, %v1058_v22 }
 0xf43   :  { %v1061_v23 = vrot.slane %v1060_v24, 1 }
 0xf45   :  { %v1062_v47 = vadd.f32 %v1061_v23, %v1060_v24 }
 0xf47   :  { %2164 = vpush %v1062_v47 }
 0xf48   :  { %2166 = vpush %v2213_v12 }
 0xf78   :  { %s2827_s1 = spop %2164 }
 0xf79   :  { %s2167_s10 = spop %2166  ;;  %v1233_v27 = vstv %s2827_s1 }
 0xf7a   :  { %s1067_s2 = smul.f32 %s2167_s10, %s2827_s1 }
 0xf7c   :  { %v1068_v30 = vstv %s1067_s2 }
 0xf7d   :  { %v1069_v32 = vmul.f32 %v1068_v30, %v2772_v62 }
 0xf7f   :  { %v2832_v35 = vadd.f32 %v1069_v32, %v2819_v3 }
 0xf81   :  { %v1078_v49 = vrot.slane %v2832_v35, %v2386_v42 }
 0xf83   :  { %v1079_v31 = vcombine.high %v1078_v49, %v1078_v49 }
 0xf85   :  { %1146 = vmatprep.mubr.f32.mxu0 %v1079_v31 }
 0xf86   :  { %1147 = vmatmul.mubr.f32.vlgmr.msra.gmra.mrb[6].mxu0 %v1078_v49 }
 0xf87   :  { %2065 = vmatpush1.bf16.msra.mxu0 %v2348_v7 }
 0xf88   :  { %2067 = vmatprep.subr.bf16.mxu0 %v2350_v8 }
 0xf8b   :  { %2069 = vmatpush1.bf16.msra.mxu0 %v2355_v13 }
 0xf8c   :  { %2071 = vmatprep.subr.bf16.mxu0 %v2359_v14 }
 0xf8f   :  { %2073 = vmatpush1.bf16.msra.mxu0 %v2363_v19 }
 0xf90   :  { %2075 = vmatprep.subr.bf16.mxu0 %v2367_v20 }
 0xf93   :  { %2077 = vmatpush1.bf16.msra.mxu0 %v2371_v28 }
 0xf94   :  { %2079 = vmatprep.subr.bf16.mxu0 %v2375_v29 }
 0xf97   :  { %2081 = vmatpush1.bf16.msra.mxu0 %v2379_v36 }
 0xf98   :  { %2083 = vmatprep.subr.bf16.mxu0 %v2383_v37 }
 0xf9b   :  { %2085 = vmatpush1.bf16.msra.mxu0 %v2389_v43 }
 0xf9c   :  { %2087 = vmatprep.subr.bf16.mxu0 %v2393_v44 }
 0xf9f   :  { %2089 = vmatpush1.bf16.msra.mxu0 %v2403_v51 }
 0xfa0   :  { %2091 = vmatprep.subr.bf16.mxu0 %v2409_v53 }
 0xfa3   :  { %2093 = vmatpush1.bf16.msra.mxu0 %v2413_v58 }
 0xfa4   :  { %2095 = vmatprep.subr.bf16.mxu0 %v2417_v59 }
 0xfa7   :  { %2097 = vmatpush1.bf16.msra.mxu0 %v2421_v0 }
 0xfa8   :  { %2099 = vmatprep.subr.bf16.mxu0 %v2425_v1 }
 0xfab   :  { %2101 = vmatpush1.bf16.msra.mxu0 %v2429_v9 }
 0xfac   :  { %2103 = vmatprep.subr.bf16.mxu0 %v2433_v10 }
 0xfaf   :  { %2105 = vmatpush1.bf16.msra.mxu0 %v2437_v17 }
 0xfb0   :  { %2107 = vmatprep.subr.bf16.mxu0 %v2441_v18 }
 0xfb3   :  { %2109 = vmatpush1.bf16.msra.mxu0 %v2445_v25 }
 0xfb4   :  { %2111 = vmatprep.subr.bf16.mxu0 %v2449_v26 }
 0xfb7   :  { %2113 = vmatpush1.bf16.msra.mxu0 %v2453_v33 }
 0xfb8   :  { %2115 = vmatprep.subr.bf16.mxu0 %v2457_v34 }
 0xfbb   :  { %2117 = vmatpush1.bf16.msra.mxu0 %v2461_v41 }
 0xfbc   :  { %2119 = vmatprep.subr.bf16.mxu0 %v2465_v45 }
 0xfbf   :  { %2121 = vmatpush1.bf16.msra.mxu0 %v2469_v54 }
 0xfc0   :  { %2123 = vmatprep.subr.bf16.mxu0 %v2473_v55 }
 0xfc3   :  { %2125 = vmatpush1.bf16.msra.mxu0 %v2477_v60 }
0x1059   :  { %v1148_v7 = vpop.f32.mrb[6].mxu0 }
0x105a   :  { %v1150_v8 = vpop.f32.mrb[7].mxu0 }
0x105b   :  { %v1155_v13 = vcombine.low %v1148_v7, %v1150_v8 }
0x105d   :  { %v1162_v14 = vrot.slane %v1155_v13, %v2386_v42 }
0x105f   :  { %v1164_v19 = vmul.f32 %v1162_v14, %v2832_v35 }
0x1061   :  { %v1172_v20 = vrot.slane %v1164_v19, %v2386_v42 }
0x1063   :  { %v1173_v28 = vcombine.high %v1172_v20, %v1172_v20  ;;  %v1176_v29 = vsel %vm213_vm0, %v1172_v20, 0.0 }
0x1065   :  { %v1177_v36 = vsel %vm213_vm0, %v1173_v28, 0.0 }
0x1066   :  { %v1178_v37 = vadd.f32 %v1177_v36, %v1176_v29 }
0x1068   :  { %1179 = vadd.xlane.f32.xlu1 %v1178_v37 }
0x10f5   :  { %v1180_v43 = vpop.xlane.xlu1 %1179 }
0x10f6   :  { %v1181_v44 = vrot.slane %v1180_v43, 4 }
0x10f8   :  { %v1182_v51 = vadd.f32 %v1181_v44, %v1180_v43 }
0x10fa   :  { %v1183_v53 = vrot.slane %v1182_v51, 2 }
0x10fc   :  { %v1184_v58 = vadd.f32 %v1183_v53, %v1182_v51 }
0x10fe   :  { %v1185_v59 = vrot.slane %v1184_v58, 1 }
0x1100   :  { %v1186_v0 = vadd.f32 %v1185_v59, %v1184_v58 }
0x1102   :  { %2168 = vpush %v1186_v0 }
0x1133   :  { %s2169_s11 = spop %2168 }
0x1134   :  { %v1188_v1 = vstv %s2169_s11 }
0x1135   :  { %2214 = vrcp.f32 %v1188_v1 }
0x1136   :  { %2216 = vrcp.f32 %v1233_v27 }
0x113f   :  { %v2215_v9 = vpop.eup %2214 }
0x1140   :  { %2170 = vpush %v2215_v9  ;;  %v2217_v61 = vpop.eup %2216 }
0x1171   :  { %s2171_s12 = spop %2170 }
0x1172   :  { %s1191_s13 = smul.f32 %s2171_s12, %s2827_s1 }
0x1174   :  { %v1192_v10 = vstv %s1191_s13 }
0x1175   :  { %v1193_v17 = vmul.f32 %v1192_v10, %v2832_v35  ;;  %v1195_v18 = vmul.f32 %v1192_v10, %v1148_v7  ;;  %v1196_v25 = vmul.f32 %v1192_v10, %v1150_v8 }
0x1177   :  { %v2875_v26 = vadd.f32 %v1193_v17, %v2815_v56  ;;  %v1199_v33 = vcombine.low %v1195_v18, %v1196_v25 }
0x1179   :  { %v1206_v34 = vrot.slane %v1199_v33, %v2386_v42 }
0x117b   :  { %v2879_v41 = vsub.f32 %v2819_v3, %v1206_v34 }
0x117d   :  { %v1209_v45 = vmul.f32 %v2879_v41, %v2879_v41 }
0x117f   :  { %v1217_v54 = vrot.slane %v1209_v45, %v2386_v42 }
0x1181   :  { %v1218_v55 = vcombine.high %v1217_v54, %v1217_v54  ;;  %v1221_v60 = vsel %vm213_vm0, %v1217_v54, 0.0 }
0x1183   :  { %v1222_v62 = vsel %vm213_vm0, %v1218_v55, 0.0 }
0x1184   :  { %v1223_v38 = vadd.f32 %v1222_v62, %v1221_v60 }
0x1186   :  { %1224 = vadd.xlane.f32.xlu0 %v1223_v38 }
0x1213   :  { %v1225_v40 = vpop.xlane.xlu0 %1224 }
0x1214   :  { %v1226_v46 = vrot.slane %v1225_v40, 4 }
0x1216   :  { %v1227_v39 = vadd.f32 %v1226_v46, %v1225_v40 }
0x1218   :  { %v1228_v52 = vrot.slane %v1227_v39, 2 }
0x121a   :  { %v1229_v48 = vadd.f32 %v1228_v52, %v1227_v39 }
0x121c   :  { %v1230_v56 = vrot.slane %v1229_v48, 1 }
0x121e   :  { %v1231_v50 = vadd.f32 %v1230_v56, %v1229_v48 }
0x1220   :  { %2172 = vpush %v1231_v50 }
0x1221   :  { %2174 = vpush %v2217_v61 }
0x1251   :  { %s2887_s14 = spop %2172 }
0x1252   :  { %s2175_s15 = spop %2174  ;;  %v1402_v1 = vstv %s2887_s14 }
0x1253   :  { %s1236_s16 = smul.f32 %s2175_s15, %s2887_s14 }
0x1255   :  { %v1237_v3 = vstv %s1236_s16 }
0x1256   :  { %v1238_v2 = vmul.f32 %v1237_v3, %v2832_v35 }
0x1258   :  { %v1239_v57 = vadd.f32 %v1238_v2, %v2879_v41 }
0x125a   :  { %v1247_v63 = vrot.slane %v1239_v57, %v2386_v42 }
0x125c   :  { %v1248_v5 = vcombine.high %v1247_v63, %v1247_v63 }
0x125e   :  { %1315 = vmatprep.mubr.f32.mxu1 %v1248_v5 }
0x125f   :  { %1316 = vmatmul.mubr.f32.vlgmr.msra.gmra.mrb[6].mxu1 %v1247_v63 }
0x1332   :  { %v1317_v11 = vpop.f32.mrb[6].mxu1 }
0x1333   :  { %v1319_v6 = vpop.f32.mrb[7].mxu1 }
0x1334   :  { %v1324_v16 = vcombine.low %v1317_v11, %v1319_v6 }
0x1336   :  { %v1331_v15 = vrot.slane %v1324_v16, %v2386_v42 }
0x1338   :  { %v1333_v21 = vmul.f32 %v1331_v15, %v1239_v57 }
0x133a   :  { %v1341_v22 = vrot.slane %v1333_v21, %v2386_v42 }
0x133c   :  { %v1342_v4 = vcombine.high %v1341_v22, %v1341_v22  ;;  %v1345_v24 = vsel %vm213_vm0, %v1341_v22, 0.0 }
0x133e   :  { %v1346_v23 = vsel %vm213_vm0, %v1342_v4, 0.0 }
0x133f   :  { %v1347_v47 = vadd.f32 %v1346_v23, %v1345_v24 }
0x1341   :  { %1348 = vadd.xlane.f32.xlu1 %v1347_v47 }
0x13ce   :  { %v1349_v12 = vpop.xlane.xlu1 %1348 }
0x13cf   :  { %v1350_v30 = vrot.slane %v1349_v12, 4 }
0x13d1   :  { %v1351_v32 = vadd.f32 %v1350_v30, %v1349_v12 }
0x13d3   :  { %v1352_v35 = vrot.slane %v1351_v32, 2 }
0x13d5   :  { %v1353_v49 = vadd.f32 %v1352_v35, %v1351_v32 }
0x13d7   :  { %v1354_v31 = vrot.slane %v1353_v49, 1 }
0x13d9   :  { %v1355_v7 = vadd.f32 %v1354_v31, %v1353_v49 }
0x13db   :  { %2176 = vpush %v1355_v7 }
0x140c   :  { %s2177_s17 = spop %2176 }
0x140d   :  { %v1357_v8 = vstv %s2177_s17 }
0x140e   :  { %2218 = vrcp.f32 %v1357_v8 }
0x140f   :  { %2220 = vrcp.f32 %v1402_v1 }
0x1418   :  { %v2219_v13 = vpop.eup %2218 }
0x1419   :  { %2178 = vpush %v2219_v13  ;;  %v2221_v34 = vpop.eup %2220 }
0x144a   :  { %s2179_s18 = spop %2178 }
0x144b   :  { %s1360_s19 = smul.f32 %s2179_s18, %s2887_s14 }
0x144d   :  { %v1361_v14 = vstv %s1360_s19 }
0x144e   :  { %v1362_v19 = vmul.f32 %v1361_v14, %v1239_v57  ;;  %v1364_v20 = vmul.f32 %v1361_v14, %v1317_v11  ;;  %v1365_v28 = vmul.f32 %v1361_v14, %v1319_v6 }
0x1450   :  { %v2899_v29 = vadd.f32 %v1362_v19, %v2875_v26  ;;  %v1368_v36 = vcombine.low %v1364_v20, %v1365_v28 }
0x1452   :  { %v1375_v37 = vrot.slane %v1368_v36, %v2386_v42 }
0x1454   :  { %v1377_v43 = vsub.f32 %v2879_v41, %v1375_v37 }
0x1456   :  { %v1378_v44 = vmul.f32 %v1377_v43, %v1377_v43 }
0x1458   :  { %v1386_v51 = vrot.slane %v1378_v44, %v2386_v42 }
0x145a   :  { %v1387_v53 = vcombine.high %v1386_v51, %v1386_v51  ;;  %v1390_v58 = vsel %vm213_vm0, %v1386_v51, 0.0 }
0x145c   :  { %v1391_v59 = vsel %vm213_vm0, %v1387_v53, 0.0 }
0x145d   :  { %v1392_v0 = vadd.f32 %v1391_v59, %v1390_v58 }
0x145f   :  { %1393 = vadd.xlane.f32.xlu0 %v1392_v0 }
0x14ec   :  { %v1394_v9 = vpop.xlane.xlu0 %1393 }
0x14ed   :  { %v1395_v10 = vrot.slane %v1394_v9, 4 }
0x14ef   :  { %v1396_v17 = vadd.f32 %v1395_v10, %v1394_v9 }
0x14f1   :  { %v1397_v18 = vrot.slane %v1396_v17, 2 }
0x14f3   :  { %v1398_v25 = vadd.f32 %v1397_v18, %v1396_v17 }
0x14f5   :  { %v1399_v26 = vrot.slane %v1398_v25, 1 }
0x14f7   :  { %v1400_v33 = vadd.f32 %v1399_v26, %v1398_v25 }
0x14f9   :  { %2180 = vpush %v1400_v33 }
0x14fa   :  { %2182 = vpush %v2221_v34 }
0x152a   :  { %s2907_s20 = spop %2180 }
0x152b   :  { %s2183_s21 = spop %2182 }
0x152c   :  { %s1405_s22 = smul.f32 %s2183_s21, %s2907_s20 }
0x152e   :  { %v1406_v41 = vstv %s1405_s22 }
0x152f   :  { %v1407_v45 = vmul.f32 %v1406_v41, %v1239_v57 }
0x1531   :  { %v1408_v54 = vadd.f32 %v1407_v45, %v1377_v43 }
0x1533   :  { %v1416_v55 = vrot.slane %v1408_v54, %v2386_v42 }
0x1535   :  { %v1417_v60 = vcombine.high %v1416_v55, %v1416_v55 }
0x1537   :  { %1484 = vmatprep.mubr.f32.mxu0 %v1417_v60 }
0x1538   :  { %1485 = vmatmul.mubr.f32.vlgmr.msra.gmra.mrb[8].mxu0 %v1416_v55 }
0x160b   :  { %v1486_v62 = vpop.f32.mrb[8].mxu0 }
0x160c   :  { %v1488_v38 = vpop.f32.mrb[9].mxu0 }
0x160d   :  { %v1493_v27 = vcombine.low %v1486_v62, %v1488_v38 }
0x160f   :  { %v1500_v40 = vrot.slane %v1493_v27, %v2386_v42 }
0x1611   :  { %v1502_v46 = vmul.f32 %v1500_v40, %v1408_v54 }
0x1613   :  { %v1510_v39 = vrot.slane %v1502_v46, %v2386_v42 }
0x1615   :  { %v1511_v52 = vcombine.high %v1510_v39, %v1510_v39  ;;  %v1514_v48 = vsel %vm213_vm0, %v1510_v39, 0.0 }
0x1617   :  { %v1515_v56 = vsel %vm213_vm0, %v1511_v52, 0.0 }
0x1618   :  { %v1516_v50 = vadd.f32 %v1515_v56, %v1514_v48 }
0x161a   :  { %1517 = vadd.xlane.f32.xlu1 %v1516_v50 }
0x16a7   :  { %v1518_v61 = vpop.xlane.xlu1 %1517 }
0x16a8   :  { %v1519_v3 = vrot.slane %v1518_v61, 4 }
0x16aa   :  { %v1520_v2 = vadd.f32 %v1519_v3, %v1518_v61 }
0x16ac   :  { %v1521_v57 = vrot.slane %v1520_v2, 2 }
0x16ae   :  { %v1522_v63 = vadd.f32 %v1521_v57, %v1520_v2 }
0x16b0   :  { %v1523_v5 = vrot.slane %v1522_v63, 1 }
0x16b2   :  { %v1524_v11 = vadd.f32 %v1523_v5, %v1522_v63 }
0x16b4   :  { %2184 = vpush %v1524_v11 }
0x16e5   :  { %s2185_s23 = spop %2184 }
0x16e6   :  { %v1526_v6 = vstv %s2185_s23 }
0x16e7   :  { %2222 = vrcp.f32 %v1526_v6 }
0x16f1   :  { %v2223_v42 = vpop.eup %2222 }
0x16f2   :  { %2186 = vpush %v2223_v42 }
0x1723   :  { %s2187_s24 = spop %2186 }
0x1724   :  { %s1529_s25 = smul.f32 %s2187_s24, %s2907_s20 }
0x1726   :  { %v1530_v16 = vstv %s1529_s25 }
0x1727   :  { %v1531_v15 = vmul.f32 %v1530_v16, %v1408_v54 }
0x1729   :  { %v1532_v21 = vadd.f32 %v1531_v15, %v2899_v29 }
0x172b   :  { %1533 = vst [vmem:[#allocation7] sm:$0xf] %v1532_v21 }
0x172c   :  { %2279 = shalt.err (!%p2276_p6)
}
0x172d   :  { %s2280_s4 = scalar_lea.hbm %s2932_s3, 64 }
0x172e   :  { %p2281_p7 = scmp.ne.s32.totalorder %s2932_s3, %s2280_s4  ;;  %p2284_p8 = scmp.lt.u32.totalorder %s2280_s4, %s2932_s3 }
0x1730   :  { %p2286_p9 = pnand %p2284_p8, %p2281_p7 }
0x1732   :  { %2289 = shalt.err (!%p2286_p9)
}
0x1733   :  { %1543 = dma.vmem_to_hbm [thread:$0]  %s1541_s27, 64, %s2932_s3, [#allocation4]  }
0x1734   :  { %2294 = dma.done.wait [#allocation4], 64  }
0x1735   :  { %2295 = vsyncadd [#allocation4], 4294967232 }
0x1736   :  { %1547 = vsyncpa [#allocation3], 1 }
0x1737   :  { %1548 = vsyncpa [#allocation6], 1 }
0x1738   :  { %1549 = vsyncpa [#allocation4], 1 }

</bundles_post_ra>
